<compile_context>
chip_gen: v7x
topology: tpu7x:2x2x1
jax: 0.10.0
libtpu: 0.0.40
codegen_flags: <defaults>
</compile_context>

<pallas_src>
import math
import jax
import jax.numpy as jnp
from jax import lax
from jax.experimental import pallas as pl
from jax.experimental.pallas import tpu as pltpu

CANN_HEADS = 4
EMBED_DIM = 128          # LSTM_H_DIM in the reference module
HEAD_DIM = EMBED_DIM // CANN_HEADS


def _cann_kernel(x_ref, wqkv_ref, bqkv_ref, wo_ref, bo_ref, ws_ref, bs_ref,
                 scores_ref, weights_ref):
    bb, L, E = x_ref.shape
    x = x_ref[...].reshape(bb * L, E)                                 # (bb*L, E)

    # Fused Q/K/V projection: single MXU matmul, 3E output columns.
    qkv = jnp.dot(x, wqkv_ref[...], preferred_element_type=jnp.float32) + bqkv_ref[...]
    scale = 1.0 / math.sqrt(HEAD_DIM)
    q_all = qkv[:, :E] * scale                                        # lane-aligned slices
    k_all = qkv[:, E:2 * E]
    v_all = qkv[:, 2 * E:]

    inv_h = 1.0 / CANN_HEADS
    for i in range(bb):                                               # static unroll: batch block
        r0 = i * L
        w_sum = jnp.zeros((L, L), jnp.float32)
        acc = jnp.zeros((L, E), jnp.float32)
        for h in range(CANN_HEADS):                                   # static unroll: 4 heads
            c0 = h * HEAD_DIM
            qh = q_all[r0:r0 + L, c0:c0 + HEAD_DIM]                   # (L, hd)
            kh = k_all[r0:r0 + L, c0:c0 + HEAD_DIM]
            vh = v_all[r0:r0 + L, c0:c0 + HEAD_DIM]
            # s = qh @ kh^T (contract head dim, no explicit transpose)
            s = lax.dot_general(qh, kh, (((1,), (1,)), ((), ())),
                                preferred_element_type=jnp.float32)   # (L, L)
            s = s - jnp.max(s, axis=-1, keepdims=True)
            p = jnp.exp(s)
            p = p / jnp.sum(p, axis=-1, keepdims=True)                # stable softmax
            w_sum = w_sum + p
            ctx = jnp.dot(p, vh, preferred_element_type=jnp.float32)  # (L, hd)
            # per-head accumulation into output projection (replaces the concat)
            acc = acc + jnp.dot(ctx, wo_ref[c0:c0 + HEAD_DIM, :],
                                preferred_element_type=jnp.float32)
        out = acc + bo_ref[...]                                       # (L, E)
        # score head Linear(E, 1): mul + lane reduction instead of 1-col matmul
        sc = jnp.sum(out * ws_ref[...], axis=-1, keepdims=True) + bs_ref[...]
        scores_ref[i] = jax.nn.sigmoid(sc)                            # (L, 1)
        weights_ref[i] = w_sum * inv_h                                # head-averaged (L, L)


def _choose_batch_block(n, seq_len, target_rows=256):
    """Biggest-tile-that-fits: whole batch in one grid step unless we can split
    into multiple steps that each still give the MXU >= target_rows rows
    (keeps a parallel grid axis for v7x's dual TensorCores on larger batches)."""
    best = n
    for d in range(1, n + 1):
        if n % d == 0 and d * seq_len >= target_rows:
            best = d
            break
    return best


def basic_cann_forward(x, params):
    """x: (L, N, E) seq-first, like PyTorch's default MultiheadAttention input."""
    L, N, E = x.shape
    assert E == EMBED_DIM
    x_bn = jnp.transpose(x, (1, 0, 2)).astype(jnp.float32)            # (N, L, E) batch-major

    in_w = params["in_proj_weight"]                                   # (3E, E) = [Wq; Wk; Wv]
    in_b = params["in_proj_bias"]                                     # (3E,)
    wqkv_t = in_w.T.astype(jnp.float32)                               # (E, 3E) = [Wq^T|Wk^T|Wv^T]
    bqkv = in_b.reshape(1, 3 * E).astype(jnp.float32)
    wo_t = params["out_proj_weight"].T.astype(jnp.float32)            # (E, E)
    bo = params["out_proj_bias"].reshape(1, E).astype(jnp.float32)
    ws = params["score_weight"].reshape(1, E).astype(jnp.float32)     # lane-dense row
    bs = params["score_bias"].reshape(1, 1).astype(jnp.float32)

    bb = _choose_batch_block(N, L)                                    # toy shapes -> bb=N, grid=(1,)
    grid = (N // bb,)

    def full_spec(shape):
        zeros = (0,) * len(shape)
        return pl.BlockSpec(shape, lambda b, _z=zeros: _z)

    grid_spec = pltpu.PrefetchScalarGridSpec(
        num_scalar_prefetch=0,
        grid=grid,
        in_specs=[
            pl.BlockSpec((bb, L, E), lambda b: (b, 0, 0)),            # x batch block
            full_spec((E, 3 * E)),                                    # fused Wqkv^T
            full_spec((1, 3 * E)),                                    # fused qkv bias
            full_spec((E, E)), full_spec((1, E)),                     # Wo^T, bo
            full_spec((1, E)), full_spec((1, 1)),                     # score weight row, bias
        ],
        out_specs=[
            pl.BlockSpec((bb, L, 1), lambda b: (b, 0, 0)),            # scores (batch-major)
            pl.BlockSpec((bb, L, L), lambda b: (b, 0, 0)),            # attn weights
        ],
    )

    scores_bn, weights = pl.pallas_call(
        _cann_kernel,
        out_shape=(jax.ShapeDtypeStruct((N, L, 1), jnp.float32),
                   jax.ShapeDtypeStruct((N, L, L), jnp.float32)),
        grid_spec=grid_spec,
        compiler_params=pltpu.CompilerParams(
            dimension_semantics=("parallel",),
            vmem_limit_bytes=32 * 1024 * 1024),
    )(x_bn, wqkv_t, bqkv, wo_t, bo, ws, bs)

    scores = jnp.transpose(scores_bn, (1, 0, 2))                      # (L, N, 1) seq-first
    return scores, weights


def _reference_forward(x, params):
    """Pure-JAX reference mirroring PyTorch nn.MultiheadAttention + score head."""
    L, N, E = x.shape
    in_w, in_b = params["in_proj_weight"], params["in_proj_bias"]
    q = x @ in_w[:E].T + in_b[:E]
    k = x @ in_w[E:2 * E].T + in_b[E:2 * E]
    v = x @ in_w[2 * E:].T + in_b[2 * E:]

    def split_heads(t):  # (L, N, E) -> (N, H, L, hd)
        return jnp.transpose(t.reshape(L, N, CANN_HEADS, HEAD_DIM), (1, 2, 0, 3))

    qh, kh, vh = split_heads(q), split_heads(k), split_heads(v)
    s = jnp.einsum("nhld,nhmd->nhlm", qh, kh) / math.sqrt(HEAD_DIM)
    p = jax.nn.softmax(s, axis=-1)
    o = jnp.einsum("nhlm,nhmd->nhld", p, vh)                          # (N, H, L, hd)
    o = jnp.transpose(o, (2, 0, 1, 3)).reshape(L, N, E)
    o = o @ params["out_proj_weight"].T + params["out_proj_bias"]
    scores = jax.nn.sigmoid(o @ params["score_weight"].T + params["score_bias"])
    return scores, jnp.mean(p, axis=1)                                # (L,N,1), (N,L,L)


def init_params(key):
    E = EMBED_DIM
    ks = jax.random.split(key, 6)
    s = 0.05
    return {
        "in_proj_weight": s * jax.random.normal(ks[0], (3 * E, E), jnp.float32),
        "in_proj_bias":   s * jax.random.normal(ks[1], (3 * E,), jnp.float32),
        "out_proj_weight": s * jax.random.normal(ks[2], (E, E), jnp.float32),
        "out_proj_bias":   s * jax.random.normal(ks[3], (E,), jnp.float32),
        "score_weight":    s * jax.random.normal(ks[4], (1, E), jnp.float32),
        "score_bias":      s * jax.random.normal(ks[5], (1,), jnp.float32),
    }


if __name__ == "__main__":
    key = jax.random.PRNGKey(0)
    pkey, xkey = jax.random.split(key)
    params = init_params(pkey)

    L, N = 8, 2                                                       # seq=8, batch=2
    x = jax.random.normal(xkey, (L, N, EMBED_DIM), jnp.float32)       # PyTorch (L, N, E)

    scores, attn_weights = basic_cann_forward(x, params)
    jax.block_until_ready((scores, attn_weights))

    ref_scores, ref_weights = _reference_forward(x, params)
    assert scores.shape == (L, N, 1) and attn_weights.shape == (N, L, L)
    assert jnp.allclose(scores, ref_scores, atol=1e-5, rtol=1e-5)
    assert jnp.allclose(attn_weights, ref_weights, atol=1e-5, rtol=1e-5)

    print("KERNEL_OK")
</pallas_src>

<mosaic_0001>
module attributes {stable_mosaic.version = 11 : i64} {
  func.func @_cann_kernel(%arg0: i32, %arg1: memref<2x8x128xf32, #tpu.memory_space<vmem>>, %arg2: memref<128x384xf32, #tpu.memory_space<vmem>>, %arg3: memref<1x384xf32, #tpu.memory_space<vmem>>, %arg4: memref<128x128xf32, #tpu.memory_space<vmem>>, %arg5: memref<1x128xf32, #tpu.memory_space<vmem>>, %arg6: memref<1x128xf32, #tpu.memory_space<vmem>>, %arg7: memref<1x1xf32, #tpu.memory_space<vmem>>, %arg8: memref<2x8x1xf32, #tpu.memory_space<vmem>>, %arg9: memref<2x8x8xf32, #tpu.memory_space<vmem>>) attributes {dimension_semantics = [#tpu.dimension_semantics<parallel>], iteration_bounds = array<i64: 1>, scalar_prefetch = 0 : i64, scratch_operands = 0 : i64, tpu.core_type = #tpu.core_type<tc>, window_params = [{transform_indices = @transform_0, window_bounds = array<i64: 2, 8, 128>}, {pipeline_mode = #tpu.pipeline_mode<synchronous>, transform_indices = @transform_1, window_bounds = array<i64: 128, 384>}, {pipeline_mode = #tpu.pipeline_mode<synchronous>, transform_indices = @transform_2, window_bounds = array<i64: 1, 384>}, {pipeline_mode = #tpu.pipeline_mode<synchronous>, transform_indices = @transform_3, window_bounds = array<i64: 128, 128>}, {pipeline_mode = #tpu.pipeline_mode<synchronous>, transform_indices = @transform_4, window_bounds = array<i64: 1, 128>}, {pipeline_mode = #tpu.pipeline_mode<synchronous>, transform_indices = @transform_5, window_bounds = array<i64: 1, 128>}, {pipeline_mode = #tpu.pipeline_mode<synchronous>, transform_indices = @transform_6, window_bounds = array<i64: 1, 1>}, {transform_indices = @transform_7, window_bounds = array<i64: 2, 8, 1>}, {transform_indices = @transform_8, window_bounds = array<i64: 2, 8, 8>}]} {
    %c0 = arith.constant 0 : index
    %c0_0 = arith.constant 0 : index
    %c0_1 = arith.constant 0 : index
    %0 = vector.load %arg1[%c0, %c0_0, %c0_1] : memref<2x8x128xf32, #tpu.memory_space<vmem>>, vector<2x8x128xf32>
    %1 = vector.shape_cast %0 : vector<2x8x128xf32> to vector<16x128xf32>
    %c0_2 = arith.constant 0 : index
    %c0_3 = arith.constant 0 : index
    %2 = vector.load %arg2[%c0_2, %c0_3] : memref<128x384xf32, #tpu.memory_space<vmem>>, vector<128x384xf32>
    %cst = arith.constant dense<0.000000e+00> : vector<16x384xf32>
    %3 = tpu.matmul %1, %2, %cst {dimension_numbers = #tpu.dot_dimension_numbers<[1], [0], [0], [1], [0, 0, 1, 1], [], []>} : vector<16x128xf32>, vector<128x384xf32>, vector<16x384xf32> -> vector<16x384xf32>
    %c0_4 = arith.constant 0 : index
    %c0_5 = arith.constant 0 : index
    %4 = vector.load %arg3[%c0_4, %c0_5] : memref<1x384xf32, #tpu.memory_space<vmem>>, vector<1x384xf32>
    %5 = vector.broadcast %4 : vector<1x384xf32> to vector<16x384xf32>
    %6 = arith.addf %3, %5 : vector<16x384xf32>
    %7 = vector.extract_strided_slice %6 {offsets = [0, 0], sizes = [16, 128], strides = [1, 1]} : vector<16x384xf32> to vector<16x128xf32>
    %cst_6 = arith.constant 0.176776692 : f32
    %8 = vector.broadcast %cst_6 : f32 to vector<16x128xf32>
    %9 = arith.mulf %7, %8 : vector<16x128xf32>
    %10 = vector.extract_strided_slice %6 {offsets = [0, 128], sizes = [16, 128], strides = [1, 1]} : vector<16x384xf32> to vector<16x128xf32>
    %11 = vector.extract_strided_slice %6 {offsets = [0, 256], sizes = [16, 128], strides = [1, 1]} : vector<16x384xf32> to vector<16x128xf32>
    %cst_7 = arith.constant 0.000000e+00 : f32
    %12 = vector.broadcast %cst_7 : f32 to vector<8x8xf32>
    %cst_8 = arith.constant 0.000000e+00 : f32
    %13 = vector.broadcast %cst_8 : f32 to vector<8x128xf32>
    %14 = vector.extract_strided_slice %9 {offsets = [0, 0], sizes = [8, 32], strides = [1, 1]} : vector<16x128xf32> to vector<8x32xf32>
    %15 = vector.extract_strided_slice %10 {offsets = [0, 0], sizes = [8, 32], strides = [1, 1]} : vector<16x128xf32> to vector<8x32xf32>
    %16 = vector.extract_strided_slice %11 {offsets = [0, 0], sizes = [8, 32], strides = [1, 1]} : vector<16x128xf32> to vector<8x32xf32>
    %cst_9 = arith.constant dense<0.000000e+00> : vector<8x8xf32>
    %17 = tpu.matmul %14, %15, %cst_9 {dimension_numbers = #tpu.dot_dimension_numbers<[1], [1], [0], [0], [0, 0, 1, 0], [], []>} : vector<8x32xf32>, vector<8x32xf32>, vector<8x8xf32> -> vector<8x8xf32>
    %cst_10 = arith.constant dense<0xFF800000> : vector<8xf32>
    %18 = vector.multi_reduction <maximumf>, %17, %cst_10 [1] : vector<8x8xf32> to vector<8xf32>
    %19 = vector.shape_cast %18 : vector<8xf32> to vector<8x1xf32>
    %20 = vector.broadcast %19 : vector<8x1xf32> to vector<8x8xf32>
    %21 = arith.subf %17, %20 : vector<8x8xf32>
    %22 = math.exp %21 : vector<8x8xf32>
    %cst_11 = arith.constant dense<0.000000e+00> : vector<8xf32>
    %23 = vector.multi_reduction <add>, %22, %cst_11 [1] : vector<8x8xf32> to vector<8xf32>
    %24 = vector.shape_cast %23 : vector<8xf32> to vector<8x1xf32>
    %25 = vector.broadcast %24 : vector<8x1xf32> to vector<8x8xf32>
    %26 = arith.divf %22, %25 : vector<8x8xf32>
    %27 = arith.addf %12, %26 : vector<8x8xf32>
    %cst_12 = arith.constant dense<0.000000e+00> : vector<8x32xf32>
    %28 = tpu.matmul %26, %16, %cst_12 {dimension_numbers = #tpu.dot_dimension_numbers<[1], [0], [0], [1], [0, 0, 1, 1], [], []>} : vector<8x8xf32>, vector<8x32xf32>, vector<8x32xf32> -> vector<8x32xf32>
    %c0_13 = arith.constant 0 : index
    %c0_14 = arith.constant 0 : index
    %29 = vector.load %arg4[%c0_13, %c0_14] : memref<128x128xf32, #tpu.memory_space<vmem>>, vector<32x128xf32>
    %cst_15 = arith.constant dense<0.000000e+00> : vector<8x128xf32>
    %30 = tpu.matmul %28, %29, %cst_15 {dimension_numbers = #tpu.dot_dimension_numbers<[1], [0], [0], [1], [0, 0, 1, 1], [], []>} : vector<8x32xf32>, vector<32x128xf32>, vector<8x128xf32> -> vector<8x128xf32>
    %31 = arith.addf %13, %30 : vector<8x128xf32>
    %32 = vector.extract_strided_slice %9 {offsets = [0, 32], sizes = [8, 32], strides = [1, 1]} : vector<16x128xf32> to vector<8x32xf32>
    %33 = vector.extract_strided_slice %10 {offsets = [0, 32], sizes = [8, 32], strides = [1, 1]} : vector<16x128xf32> to vector<8x32xf32>
    %34 = vector.extract_strided_slice %11 {offsets = [0, 32], sizes = [8, 32], strides = [1, 1]} : vector<16x128xf32> to vector<8x32xf32>
    %cst_16 = arith.constant dense<0.000000e+00> : vector<8x8xf32>
    %35 = tpu.matmul %32, %33, %cst_16 {dimension_numbers = #tpu.dot_dimension_numbers<[1], [1], [0], [0], [0, 0, 1, 0], [], []>} : vector<8x32xf32>, vector<8x32xf32>, vector<8x8xf32> -> vector<8x8xf32>
    %cst_17 = arith.constant dense<0xFF800000> : vector<8xf32>
    %36 = vector.multi_reduction <maximumf>, %35, %cst_17 [1] : vector<8x8xf32> to vector<8xf32>
    %37 = vector.shape_cast %36 : vector<8xf32> to vector<8x1xf32>
    %38 = vector.broadcast %37 : vector<8x1xf32> to vector<8x8xf32>
    %39 = arith.subf %35, %38 : vector<8x8xf32>
    %40 = math.exp %39 : vector<8x8xf32>
    %cst_18 = arith.constant dense<0.000000e+00> : vector<8xf32>
    %41 = vector.multi_reduction <add>, %40, %cst_18 [1] : vector<8x8xf32> to vector<8xf32>
    %42 = vector.shape_cast %41 : vector<8xf32> to vector<8x1xf32>
    %43 = vector.broadcast %42 : vector<8x1xf32> to vector<8x8xf32>
    %44 = arith.divf %40, %43 : vector<8x8xf32>
    %45 = arith.addf %27, %44 : vector<8x8xf32>
    %cst_19 = arith.constant dense<0.000000e+00> : vector<8x32xf32>
    %46 = tpu.matmul %44, %34, %cst_19 {dimension_numbers = #tpu.dot_dimension_numbers<[1], [0], [0], [1], [0, 0, 1, 1], [], []>} : vector<8x8xf32>, vector<8x32xf32>, vector<8x32xf32> -> vector<8x32xf32>
    %c32 = arith.constant 32 : index
    %c0_20 = arith.constant 0 : index
    %47 = vector.load %arg4[%c32, %c0_20] : memref<128x128xf32, #tpu.memory_space<vmem>>, vector<32x128xf32>
    %cst_21 = arith.constant dense<0.000000e+00> : vector<8x128xf32>
    %48 = tpu.matmul %46, %47, %cst_21 {dimension_numbers = #tpu.dot_dimension_numbers<[1], [0], [0], [1], [0, 0, 1, 1], [], []>} : vector<8x32xf32>, vector<32x128xf32>, vector<8x128xf32> -> vector<8x128xf32>
    %49 = arith.addf %31, %48 : vector<8x128xf32>
    %50 = vector.extract_strided_slice %9 {offsets = [0, 64], sizes = [8, 32], strides = [1, 1]} : vector<16x128xf32> to vector<8x32xf32>
    %51 = vector.extract_strided_slice %10 {offsets = [0, 64], sizes = [8, 32], strides = [1, 1]} : vector<16x128xf32> to vector<8x32xf32>
    %52 = vector.extract_strided_slice %11 {offsets = [0, 64], sizes = [8, 32], strides = [1, 1]} : vector<16x128xf32> to vector<8x32xf32>
    %cst_22 = arith.constant dense<0.000000e+00> : vector<8x8xf32>
    %53 = tpu.matmul %50, %51, %cst_22 {dimension_numbers = #tpu.dot_dimension_numbers<[1], [1], [0], [0], [0, 0, 1, 0], [], []>} : vector<8x32xf32>, vector<8x32xf32>, vector<8x8xf32> -> vector<8x8xf32>
    %cst_23 = arith.constant dense<0xFF800000> : vector<8xf32>
    %54 = vector.multi_reduction <maximumf>, %53, %cst_23 [1] : vector<8x8xf32> to vector<8xf32>
    %55 = vector.shape_cast %54 : vector<8xf32> to vector<8x1xf32>
    %56 = vector.broadcast %55 : vector<8x1xf32> to vector<8x8xf32>
    %57 = arith.subf %53, %56 : vector<8x8xf32>
    %58 = math.exp %57 : vector<8x8xf32>
    %cst_24 = arith.constant dense<0.000000e+00> : vector<8xf32>
    %59 = vector.multi_reduction <add>, %58, %cst_24 [1] : vector<8x8xf32> to vector<8xf32>
    %60 = vector.shape_cast %59 : vector<8xf32> to vector<8x1xf32>
    %61 = vector.broadcast %60 : vector<8x1xf32> to vector<8x8xf32>
    %62 = arith.divf %58, %61 : vector<8x8xf32>
    %63 = arith.addf %45, %62 : vector<8x8xf32>
    %cst_25 = arith.constant dense<0.000000e+00> : vector<8x32xf32>
    %64 = tpu.matmul %62, %52, %cst_25 {dimension_numbers = #tpu.dot_dimension_numbers<[1], [0], [0], [1], [0, 0, 1, 1], [], []>} : vector<8x8xf32>, vector<8x32xf32>, vector<8x32xf32> -> vector<8x32xf32>
    %c64 = arith.constant 64 : index
    %c0_26 = arith.constant 0 : index
    %65 = vector.load %arg4[%c64, %c0_26] : memref<128x128xf32, #tpu.memory_space<vmem>>, vector<32x128xf32>
    %cst_27 = arith.constant dense<0.000000e+00> : vector<8x128xf32>
    %66 = tpu.matmul %64, %65, %cst_27 {dimension_numbers = #tpu.dot_dimension_numbers<[1], [0], [0], [1], [0, 0, 1, 1], [], []>} : vector<8x32xf32>, vector<32x128xf32>, vector<8x128xf32> -> vector<8x128xf32>
    %67 = arith.addf %49, %66 : vector<8x128xf32>
    %68 = vector.extract_strided_slice %9 {offsets = [0, 96], sizes = [8, 32], strides = [1, 1]} : vector<16x128xf32> to vector<8x32xf32>
    %69 = vector.extract_strided_slice %10 {offsets = [0, 96], sizes = [8, 32], strides = [1, 1]} : vector<16x128xf32> to vector<8x32xf32>
    %70 = vector.extract_strided_slice %11 {offsets = [0, 96], sizes = [8, 32], strides = [1, 1]} : vector<16x128xf32> to vector<8x32xf32>
    %cst_28 = arith.constant dense<0.000000e+00> : vector<8x8xf32>
    %71 = tpu.matmul %68, %69, %cst_28 {dimension_numbers = #tpu.dot_dimension_numbers<[1], [1], [0], [0], [0, 0, 1, 0], [], []>} : vector<8x32xf32>, vector<8x32xf32>, vector<8x8xf32> -> vector<8x8xf32>
    %cst_29 = arith.constant dense<0xFF800000> : vector<8xf32>
    %72 = vector.multi_reduction <maximumf>, %71, %cst_29 [1] : vector<8x8xf32> to vector<8xf32>
    %73 = vector.shape_cast %72 : vector<8xf32> to vector<8x1xf32>
    %74 = vector.broadcast %73 : vector<8x1xf32> to vector<8x8xf32>
    %75 = arith.subf %71, %74 : vector<8x8xf32>
    %76 = math.exp %75 : vector<8x8xf32>
    %cst_30 = arith.constant dense<0.000000e+00> : vector<8xf32>
    %77 = vector.multi_reduction <add>, %76, %cst_30 [1] : vector<8x8xf32> to vector<8xf32>
    %78 = vector.shape_cast %77 : vector<8xf32> to vector<8x1xf32>
    %79 = vector.broadcast %78 : vector<8x1xf32> to vector<8x8xf32>
    %80 = arith.divf %76, %79 : vector<8x8xf32>
    %81 = arith.addf %63, %80 : vector<8x8xf32>
    %cst_31 = arith.constant dense<0.000000e+00> : vector<8x32xf32>
    %82 = tpu.matmul %80, %70, %cst_31 {dimension_numbers = #tpu.dot_dimension_numbers<[1], [0], [0], [1], [0, 0, 1, 1], [], []>} : vector<8x8xf32>, vector<8x32xf32>, vector<8x32xf32> -> vector<8x32xf32>
    %c96 = arith.constant 96 : index
    %c0_32 = arith.constant 0 : index
    %83 = vector.load %arg4[%c96, %c0_32] : memref<128x128xf32, #tpu.memory_space<vmem>>, vector<32x128xf32>
    %cst_33 = arith.constant dense<0.000000e+00> : vector<8x128xf32>
    %84 = tpu.matmul %82, %83, %cst_33 {dimension_numbers = #tpu.dot_dimension_numbers<[1], [0], [0], [1], [0, 0, 1, 1], [], []>} : vector<8x32xf32>, vector<32x128xf32>, vector<8x128xf32> -> vector<8x128xf32>
    %85 = arith.addf %67, %84 : vector<8x128xf32>
    %c0_34 = arith.constant 0 : index
    %c0_35 = arith.constant 0 : index
    %86 = vector.load %arg5[%c0_34, %c0_35] : memref<1x128xf32, #tpu.memory_space<vmem>>, vector<1x128xf32>
    %87 = vector.broadcast %86 : vector<1x128xf32> to vector<8x128xf32>
    %88 = arith.addf %85, %87 : vector<8x128xf32>
    %c0_36 = arith.constant 0 : index
    %c0_37 = arith.constant 0 : index
    %89 = vector.load %arg6[%c0_36, %c0_37] : memref<1x128xf32, #tpu.memory_space<vmem>>, vector<1x128xf32>
    %90 = vector.broadcast %89 : vector<1x128xf32> to vector<8x128xf32>
    %91 = arith.mulf %88, %90 : vector<8x128xf32>
    %cst_38 = arith.constant dense<0.000000e+00> : vector<8xf32>
    %92 = vector.multi_reduction <add>, %91, %cst_38 [1] : vector<8x128xf32> to vector<8xf32>
    %93 = vector.shape_cast %92 : vector<8xf32> to vector<8x1xf32>
    %c0_39 = arith.constant 0 : index
    %c0_40 = arith.constant 0 : index
    %94 = vector.load %arg7[%c0_39, %c0_40] : memref<1x1xf32, #tpu.memory_space<vmem>>, vector<1x1xf32>
    %95 = vector.broadcast %94 : vector<1x1xf32> to vector<8x1xf32>
    %96 = arith.addf %93, %95 : vector<8x1xf32>
    %97 = arith.negf %96 : vector<8x1xf32>
    %98 = math.exp %97 : vector<8x1xf32>
    %cst_41 = arith.constant 1.000000e+00 : f32
    %99 = vector.broadcast %cst_41 : f32 to vector<8x1xf32>
    %100 = arith.addf %99, %98 : vector<8x1xf32>
    %101 = arith.divf %99, %100 : vector<8x1xf32>
    %c0_42 = arith.constant 0 : index
    %c0_43 = arith.constant 0 : index
    %c0_44 = arith.constant 0 : index
    %102 = vector.load %arg8[%c0_42, %c0_43, %c0_44] : memref<2x8x1xf32, #tpu.memory_space<vmem>>, vector<1x8x1xf32>
    %103 = vector.shape_cast %102 : vector<1x8x1xf32> to vector<8x1xf32>
    %104 = vector.shape_cast %101 : vector<8x1xf32> to vector<1x8x1xf32>
    tpu.vector_store %arg8[%c0_42, %c0_43, %c0_44], %104 {strides = array<i32>} : memref<2x8x1xf32, #tpu.memory_space<vmem>>, vector<1x8x1xf32>,
    %cst_45 = arith.constant 2.500000e-01 : f32
    %105 = vector.broadcast %cst_45 : f32 to vector<8x8xf32>
    %106 = arith.mulf %81, %105 : vector<8x8xf32>
    %c0_46 = arith.constant 0 : index
    %c0_47 = arith.constant 0 : index
    %c0_48 = arith.constant 0 : index
    %107 = vector.load %arg9[%c0_46, %c0_47, %c0_48] : memref<2x8x8xf32, #tpu.memory_space<vmem>>, vector<1x8x8xf32>
    %108 = vector.shape_cast %107 : vector<1x8x8xf32> to vector<8x8xf32>
    %109 = vector.shape_cast %106 : vector<8x8xf32> to vector<1x8x8xf32>
    tpu.vector_store %arg9[%c0_46, %c0_47, %c0_48], %109 {strides = array<i32>} : memref<2x8x8xf32, #tpu.memory_space<vmem>>, vector<1x8x8xf32>,
    %cst_49 = arith.constant 0.000000e+00 : f32
    %110 = vector.broadcast %cst_49 : f32 to vector<8x8xf32>
    %cst_50 = arith.constant 0.000000e+00 : f32
    %111 = vector.broadcast %cst_50 : f32 to vector<8x128xf32>
    %112 = vector.extract_strided_slice %9 {offsets = [8, 0], sizes = [8, 32], strides = [1, 1]} : vector<16x128xf32> to vector<8x32xf32>
    %113 = vector.extract_strided_slice %10 {offsets = [8, 0], sizes = [8, 32], strides = [1, 1]} : vector<16x128xf32> to vector<8x32xf32>
    %114 = vector.extract_strided_slice %11 {offsets = [8, 0], sizes = [8, 32], strides = [1, 1]} : vector<16x128xf32> to vector<8x32xf32>
    %cst_51 = arith.constant dense<0.000000e+00> : vector<8x8xf32>
    %115 = tpu.matmul %112, %113, %cst_51 {dimension_numbers = #tpu.dot_dimension_numbers<[1], [1], [0], [0], [0, 0, 1, 0], [], []>} : vector<8x32xf32>, vector<8x32xf32>, vector<8x8xf32> -> vector<8x8xf32>
    %cst_52 = arith.constant dense<0xFF800000> : vector<8xf32>
    %116 = vector.multi_reduction <maximumf>, %115, %cst_52 [1] : vector<8x8xf32> to vector<8xf32>
    %117 = vector.shape_cast %116 : vector<8xf32> to vector<8x1xf32>
    %118 = vector.broadcast %117 : vector<8x1xf32> to vector<8x8xf32>
    %119 = arith.subf %115, %118 : vector<8x8xf32>
    %120 = math.exp %119 : vector<8x8xf32>
    %cst_53 = arith.constant dense<0.000000e+00> : vector<8xf32>
    %121 = vector.multi_reduction <add>, %120, %cst_53 [1] : vector<8x8xf32> to vector<8xf32>
    %122 = vector.shape_cast %121 : vector<8xf32> to vector<8x1xf32>
    %123 = vector.broadcast %122 : vector<8x1xf32> to vector<8x8xf32>
    %124 = arith.divf %120, %123 : vector<8x8xf32>
    %125 = arith.addf %110, %124 : vector<8x8xf32>
    %cst_54 = arith.constant dense<0.000000e+00> : vector<8x32xf32>
    %126 = tpu.matmul %124, %114, %cst_54 {dimension_numbers = #tpu.dot_dimension_numbers<[1], [0], [0], [1], [0, 0, 1, 1], [], []>} : vector<8x8xf32>, vector<8x32xf32>, vector<8x32xf32> -> vector<8x32xf32>
    %c0_55 = arith.constant 0 : index
    %c0_56 = arith.constant 0 : index
    %127 = vector.load %arg4[%c0_55, %c0_56] : memref<128x128xf32, #tpu.memory_space<vmem>>, vector<32x128xf32>
    %cst_57 = arith.constant dense<0.000000e+00> : vector<8x128xf32>
    %128 = tpu.matmul %126, %127, %cst_57 {dimension_numbers = #tpu.dot_dimension_numbers<[1], [0], [0], [1], [0, 0, 1, 1], [], []>} : vector<8x32xf32>, vector<32x128xf32>, vector<8x128xf32> -> vector<8x128xf32>
    %129 = arith.addf %111, %128 : vector<8x128xf32>
    %130 = vector.extract_strided_slice %9 {offsets = [8, 32], sizes = [8, 32], strides = [1, 1]} : vector<16x128xf32> to vector<8x32xf32>
    %131 = vector.extract_strided_slice %10 {offsets = [8, 32], sizes = [8, 32], strides = [1, 1]} : vector<16x128xf32> to vector<8x32xf32>
    %132 = vector.extract_strided_slice %11 {offsets = [8, 32], sizes = [8, 32], strides = [1, 1]} : vector<16x128xf32> to vector<8x32xf32>
    %cst_58 = arith.constant dense<0.000000e+00> : vector<8x8xf32>
    %133 = tpu.matmul %130, %131, %cst_58 {dimension_numbers = #tpu.dot_dimension_numbers<[1], [1], [0], [0], [0, 0, 1, 0], [], []>} : vector<8x32xf32>, vector<8x32xf32>, vector<8x8xf32> -> vector<8x8xf32>
    %cst_59 = arith.constant dense<0xFF800000> : vector<8xf32>
    %134 = vector.multi_reduction <maximumf>, %133, %cst_59 [1] : vector<8x8xf32> to vector<8xf32>
    %135 = vector.shape_cast %134 : vector<8xf32> to vector<8x1xf32>
    %136 = vector.broadcast %135 : vector<8x1xf32> to vector<8x8xf32>
    %137 = arith.subf %133, %136 : vector<8x8xf32>
    %138 = math.exp %137 : vector<8x8xf32>
    %cst_60 = arith.constant dense<0.000000e+00> : vector<8xf32>
    %139 = vector.multi_reduction <add>, %138, %cst_60 [1] : vector<8x8xf32> to vector<8xf32>
    %140 = vector.shape_cast %139 : vector<8xf32> to vector<8x1xf32>
    %141 = vector.broadcast %140 : vector<8x1xf32> to vector<8x8xf32>
    %142 = arith.divf %138, %141 : vector<8x8xf32>
    %143 = arith.addf %125, %142 : vector<8x8xf32>
    %cst_61 = arith.constant dense<0.000000e+00> : vector<8x32xf32>
    %144 = tpu.matmul %142, %132, %cst_61 {dimension_numbers = #tpu.dot_dimension_numbers<[1], [0], [0], [1], [0, 0, 1, 1], [], []>} : vector<8x8xf32>, vector<8x32xf32>, vector<8x32xf32> -> vector<8x32xf32>
    %c32_62 = arith.constant 32 : index
    %c0_63 = arith.constant 0 : index
    %145 = vector.load %arg4[%c32_62, %c0_63] : memref<128x128xf32, #tpu.memory_space<vmem>>, vector<32x128xf32>
    %cst_64 = arith.constant dense<0.000000e+00> : vector<8x128xf32>
    %146 = tpu.matmul %144, %145, %cst_64 {dimension_numbers = #tpu.dot_dimension_numbers<[1], [0], [0], [1], [0, 0, 1, 1], [], []>} : vector<8x32xf32>, vector<32x128xf32>, vector<8x128xf32> -> vector<8x128xf32>
    %147 = arith.addf %129, %146 : vector<8x128xf32>
    %148 = vector.extract_strided_slice %9 {offsets = [8, 64], sizes = [8, 32], strides = [1, 1]} : vector<16x128xf32> to vector<8x32xf32>
    %149 = vector.extract_strided_slice %10 {offsets = [8, 64], sizes = [8, 32], strides = [1, 1]} : vector<16x128xf32> to vector<8x32xf32>
    %150 = vector.extract_strided_slice %11 {offsets = [8, 64], sizes = [8, 32], strides = [1, 1]} : vector<16x128xf32> to vector<8x32xf32>
    %cst_65 = arith.constant dense<0.000000e+00> : vector<8x8xf32>
    %151 = tpu.matmul %148, %149, %cst_65 {dimension_numbers = #tpu.dot_dimension_numbers<[1], [1], [0], [0], [0, 0, 1, 0], [], []>} : vector<8x32xf32>, vector<8x32xf32>, vector<8x8xf32> -> vector<8x8xf32>
    %cst_66 = arith.constant dense<0xFF800000> : vector<8xf32>
    %152 = vector.multi_reduction <maximumf>, %151, %cst_66 [1] : vector<8x8xf32> to vector<8xf32>
    %153 = vector.shape_cast %152 : vector<8xf32> to vector<8x1xf32>
    %154 = vector.broadcast %153 : vector<8x1xf32> to vector<8x8xf32>
    %155 = arith.subf %151, %154 : vector<8x8xf32>
    %156 = math.exp %155 : vector<8x8xf32>
    %cst_67 = arith.constant dense<0.000000e+00> : vector<8xf32>
    %157 = vector.multi_reduction <add>, %156, %cst_67 [1] : vector<8x8xf32> to vector<8xf32>
    %158 = vector.shape_cast %157 : vector<8xf32> to vector<8x1xf32>
    %159 = vector.broadcast %158 : vector<8x1xf32> to vector<8x8xf32>
    %160 = arith.divf %156, %159 : vector<8x8xf32>
    %161 = arith.addf %143, %160 : vector<8x8xf32>
    %cst_68 = arith.constant dense<0.000000e+00> : vector<8x32xf32>
    %162 = tpu.matmul %160, %150, %cst_68 {dimension_numbers = #tpu.dot_dimension_numbers<[1], [0], [0], [1], [0, 0, 1, 1], [], []>} : vector<8x8xf32>, vector<8x32xf32>, vector<8x32xf32> -> vector<8x32xf32>
    %c64_69 = arith.constant 64 : index
    %c0_70 = arith.constant 0 : index
    %163 = vector.load %arg4[%c64_69, %c0_70] : memref<128x128xf32, #tpu.memory_space<vmem>>, vector<32x128xf32>
    %cst_71 = arith.constant dense<0.000000e+00> : vector<8x128xf32>
    %164 = tpu.matmul %162, %163, %cst_71 {dimension_numbers = #tpu.dot_dimension_numbers<[1], [0], [0], [1], [0, 0, 1, 1], [], []>} : vector<8x32xf32>, vector<32x128xf32>, vector<8x128xf32> -> vector<8x128xf32>
    %165 = arith.addf %147, %164 : vector<8x128xf32>
    %166 = vector.extract_strided_slice %9 {offsets = [8, 96], sizes = [8, 32], strides = [1, 1]} : vector<16x128xf32> to vector<8x32xf32>
    %167 = vector.extract_strided_slice %10 {offsets = [8, 96], sizes = [8, 32], strides = [1, 1]} : vector<16x128xf32> to vector<8x32xf32>
    %168 = vector.extract_strided_slice %11 {offsets = [8, 96], sizes = [8, 32], strides = [1, 1]} : vector<16x128xf32> to vector<8x32xf32>
    %cst_72 = arith.constant dense<0.000000e+00> : vector<8x8xf32>
    %169 = tpu.matmul %166, %167, %cst_72 {dimension_numbers = #tpu.dot_dimension_numbers<[1], [1], [0], [0], [0, 0, 1, 0], [], []>} : vector<8x32xf32>, vector<8x32xf32>, vector<8x8xf32> -> vector<8x8xf32>
    %cst_73 = arith.constant dense<0xFF800000> : vector<8xf32>
    %170 = vector.multi_reduction <maximumf>, %169, %cst_73 [1] : vector<8x8xf32> to vector<8xf32>
    %171 = vector.shape_cast %170 : vector<8xf32> to vector<8x1xf32>
    %172 = vector.broadcast %171 : vector<8x1xf32> to vector<8x8xf32>
    %173 = arith.subf %169, %172 : vector<8x8xf32>
    %174 = math.exp %173 : vector<8x8xf32>
    %cst_74 = arith.constant dense<0.000000e+00> : vector<8xf32>
    %175 = vector.multi_reduction <add>, %174, %cst_74 [1] : vector<8x8xf32> to vector<8xf32>
    %176 = vector.shape_cast %175 : vector<8xf32> to vector<8x1xf32>
    %177 = vector.broadcast %176 : vector<8x1xf32> to vector<8x8xf32>
    %178 = arith.divf %174, %177 : vector<8x8xf32>
    %179 = arith.addf %161, %178 : vector<8x8xf32>
    %cst_75 = arith.constant dense<0.000000e+00> : vector<8x32xf32>
    %180 = tpu.matmul %178, %168, %cst_75 {dimension_numbers = #tpu.dot_dimension_numbers<[1], [0], [0], [1], [0, 0, 1, 1], [], []>} : vector<8x8xf32>, vector<8x32xf32>, vector<8x32xf32> -> vector<8x32xf32>
    %c96_76 = arith.constant 96 : index
    %c0_77 = arith.constant 0 : index
    %181 = vector.load %arg4[%c96_76, %c0_77] : memref<128x128xf32, #tpu.memory_space<vmem>>, vector<32x128xf32>
    %cst_78 = arith.constant dense<0.000000e+00> : vector<8x128xf32>
    %182 = tpu.matmul %180, %181, %cst_78 {dimension_numbers = #tpu.dot_dimension_numbers<[1], [0], [0], [1], [0, 0, 1, 1], [], []>} : vector<8x32xf32>, vector<32x128xf32>, vector<8x128xf32> -> vector<8x128xf32>
    %183 = arith.addf %165, %182 : vector<8x128xf32>
    %c0_79 = arith.constant 0 : index
    %c0_80 = arith.constant 0 : index
    %184 = vector.load %arg5[%c0_79, %c0_80] : memref<1x128xf32, #tpu.memory_space<vmem>>, vector<1x128xf32>
    %185 = vector.broadcast %184 : vector<1x128xf32> to vector<8x128xf32>
    %186 = arith.addf %183, %185 : vector<8x128xf32>
    %c0_81 = arith.constant 0 : index
    %c0_82 = arith.constant 0 : index
    %187 = vector.load %arg6[%c0_81, %c0_82] : memref<1x128xf32, #tpu.memory_space<vmem>>, vector<1x128xf32>
    %188 = vector.broadcast %187 : vector<1x128xf32> to vector<8x128xf32>
    %189 = arith.mulf %186, %188 : vector<8x128xf32>
    %cst_83 = arith.constant dense<0.000000e+00> : vector<8xf32>
    %190 = vector.multi_reduction <add>, %189, %cst_83 [1] : vector<8x128xf32> to vector<8xf32>
    %191 = vector.shape_cast %190 : vector<8xf32> to vector<8x1xf32>
    %c0_84 = arith.constant 0 : index
    %c0_85 = arith.constant 0 : index
    %192 = vector.load %arg7[%c0_84, %c0_85] : memref<1x1xf32, #tpu.memory_space<vmem>>, vector<1x1xf32>
    %193 = vector.broadcast %192 : vector<1x1xf32> to vector<8x1xf32>
    %194 = arith.addf %191, %193 : vector<8x1xf32>
    %195 = arith.negf %194 : vector<8x1xf32>
    %196 = math.exp %195 : vector<8x1xf32>
    %cst_86 = arith.constant 1.000000e+00 : f32
    %197 = vector.broadcast %cst_86 : f32 to vector<8x1xf32>
    %198 = arith.addf %197, %196 : vector<8x1xf32>
    %199 = arith.divf %197, %198 : vector<8x1xf32>
    %c1 = arith.constant 1 : index
    %c0_87 = arith.constant 0 : index
    %c0_88 = arith.constant 0 : index
    %200 = vector.load %arg8[%c1, %c0_87, %c0_88] : memref<2x8x1xf32, #tpu.memory_space<vmem>>, vector<1x8x1xf32>
    %201 = vector.shape_cast %200 : vector<1x8x1xf32> to vector<8x1xf32>
    %202 = vector.shape_cast %199 : vector<8x1xf32> to vector<1x8x1xf32>
    tpu.vector_store %arg8[%c1, %c0_87, %c0_88], %202 {strides = array<i32>} : memref<2x8x1xf32, #tpu.memory_space<vmem>>, vector<1x8x1xf32>,
    %cst_89 = arith.constant 2.500000e-01 : f32
    %203 = vector.broadcast %cst_89 : f32 to vector<8x8xf32>
    %204 = arith.mulf %179, %203 : vector<8x8xf32>
    %c1_90 = arith.constant 1 : index
    %c0_91 = arith.constant 0 : index
    %c0_92 = arith.constant 0 : index
    %205 = vector.load %arg9[%c1_90, %c0_91, %c0_92] : memref<2x8x8xf32, #tpu.memory_space<vmem>>, vector<1x8x8xf32>
    %206 = vector.shape_cast %205 : vector<1x8x8xf32> to vector<8x8xf32>
    %207 = vector.shape_cast %204 : vector<8x8xf32> to vector<1x8x8xf32>
    tpu.vector_store %arg9[%c1_90, %c0_91, %c0_92], %207 {strides = array<i32>} : memref<2x8x8xf32, #tpu.memory_space<vmem>>, vector<1x8x8xf32>,
    return
  }
  func.func @transform_0(%arg0: i32) -> (i32, i32, i32) {
    %c0_i32 = arith.constant 0 : i32
    %c0_i32_0 = arith.constant 0 : i32
    %c0_i32_1 = arith.constant 0 : i32
    return %arg0, %c0_i32, %c0_i32_0 : i32, i32, i32
  }
  func.func @transform_1(%arg0: i32) -> (i32, i32) {
    %c0_i32 = arith.constant 0 : i32
    %c0_i32_0 = arith.constant 0 : i32
    %c0_i32_1 = arith.constant 0 : i32
    return %c0_i32, %c0_i32_0 : i32, i32
  }
  func.func @transform_2(%arg0: i32) -> (i32, i32) {
    %c0_i32 = arith.constant 0 : i32
    %c0_i32_0 = arith.constant 0 : i32
    %c0_i32_1 = arith.constant 0 : i32
    return %c0_i32, %c0_i32_0 : i32, i32
  }
  func.func @transform_3(%arg0: i32) -> (i32, i32) {
    %c0_i32 = arith.constant 0 : i32
    %c0_i32_0 = arith.constant 0 : i32
    %c0_i32_1 = arith.constant 0 : i32
    return %c0_i32, %c0_i32_0 : i32, i32
  }
  func.func @transform_4(%arg0: i32) -> (i32, i32) {
    %c0_i32 = arith.constant 0 : i32
    %c0_i32_0 = arith.constant 0 : i32
    %c0_i32_1 = arith.constant 0 : i32
    return %c0_i32, %c0_i32_0 : i32, i32
  }
  func.func @transform_5(%arg0: i32) -> (i32, i32) {
    %c0_i32 = arith.constant 0 : i32
    %c0_i32_0 = arith.constant 0 : i32
    %c0_i32_1 = arith.constant 0 : i32
    return %c0_i32, %c0_i32_0 : i32, i32
  }
  func.func @transform_6(%arg0: i32) -> (i32, i32) {
    %c0_i32 = arith.constant 0 : i32
    %c0_i32_0 = arith.constant 0 : i32
    %c0_i32_1 = arith.constant 0 : i32
    return %c0_i32, %c0_i32_0 : i32, i32
  }
  func.func @transform_7(%arg0: i32) -> (i32, i32, i32) {
    %c0_i32 = arith.constant 0 : i32
    %c0_i32_0 = arith.constant 0 : i32
    %c0_i32_1 = arith.constant 0 : i32
    return %arg0, %c0_i32, %c0_i32_0 : i32, i32, i32
  }
  func.func @transform_8(%arg0: i32) -> (i32, i32, i32) {
    %c0_i32 = arith.constant 0 : i32
    %c0_i32_0 = arith.constant 0 : i32
    %c0_i32_1 = arith.constant 0 : i32
    return %arg0, %c0_i32, %c0_i32_0 : i32, i32, i32
  }
}

</mosaic_0001>

<bundles_post_ra>
// kernel: tpu_custom_call.1
= control target key start
LH: loop header
LB: loop body
LE: loop exit
PB: predicated region body
PF: predicated region fallthrough
CT: control target
= control target key end

     0   :  { %s3304_s0 = inlined_call_operand.hbm [shape: f32[2,8,128], index: 0, kind: input, shape index: {}]   ;;  %s3305_s1 = inlined_call_operand.hbm [shape: f32[128,384], index: 1, kind: input, shape index: {}]   ;;  %s3306_s2 = inlined_call_operand.vmem [shape: f32[1,384], index: 2, kind: input, shape index: {}]   ;;  %s3307_s3 = inlined_call_operand.hbm [shape: f32[128,128], index: 3, kind: input, shape index: {}]   ;;  %s3308_s4 = inlined_call_operand.vmem [shape: f32[1,128], index: 4, kind: input, shape index: {}]   ;;  %s3309_s5 = inlined_call_operand.vmem [shape: f32[1,128], index: 5, kind: input, shape index: {}]   ;;  %s3310_s6 = inlined_call_operand.<no memory space> [shape: f32[1,1], index: 6, kind: input, shape index: {}]   ;;  %s3311_s7 = inlined_call_operand.vmem [shape: f32[2,8,1], index: 7, kind: output, shape index: {0}]   ;;  %s3312_s8 = inlined_call_operand.hbm [shape: f32[2,8,8], index: 8, kind: output, shape index: {1}]  }
   0x1   :  { %v14_v0 = vstv %s3310_s6 }
   0x2   :  { %15 = vst [vmem:[#allocation2] sm:$0x1] %v14_v0 }
   0x3   :  { %16 = vsyncpa [#allocation4], 0 }
   0x4   :  { %17 = vsyncpa [#allocation7], 0 }
   0x5   :  { %18 = vsyncpa [#allocation5], 0  ;;  %s2924_s29 = smov [#allocation6]   ;;  %s2830_s11 = scalar_lea.hbm %s3305_s1, 6144 }
   0x6   :  { %s36_s30 = sshll.u32 %s2924_s29, 4  ;;  %p2831_p0 = scmp.ne.s32.totalorder %s3305_s1, %s2830_s11  ;;  %s37_s30 = int_to_ptr.vmem [resolvable:$true] %s36_s30 }
   0x7   :  { %p2834_p1 = scmp.lt.u32.totalorder %s2830_s11, %s3305_s1 }
   0x9   :  { %p2836_p2 = pnand %p2834_p1, %p2831_p0 }
   0xb   :  { %2839 = shalt.err (!%p2836_p2)
}
   0xc   :  { %s2840_s6 = scalar_lea.vmem %s37_s30, 6144  ;;  %p2845_p4 = scmp.lt.s32.totalorder %s37_s30, %s37_s30 }
   0xd   :  { %p2841_p3 = scmp.ne.s32.totalorder %s37_s30, %s2840_s6  ;;  %p2846_p5 = scmp.lt.s32.totalorder %s2840_s6, %s2840_s6 }
   0xf   :  { %p2847_p6 = por %p2846_p5, %p2845_p4 }
  0x11   :  { %p2848_p7 = pnand %p2847_p6, %p2841_p3 }
  0x13   :  { %2851 = shalt.err (!%p2848_p7)
}
  0x14   :  { %s2925_s16 = smov 384   ;;  %s2926_s17 = smov 24  }
  0x15   :  { %42 = dma.hbm_to_vmem [thread:$0]  %s3305_s1, 6144, %s37_s30, [#allocation7], %s2925_s16, %s2925_s16, %s2926_s17  }
  0x16   :  { %s2927_s20 = smov [#allocation3]   ;;  %s2852_s24 = scalar_lea.hbm %s3304_s0, 256 }
  0x17   :  { %s24_s21 = sshll.u32 %s2927_s20, 4  ;;  %p2853_p8 = scmp.ne.s32.totalorder %s3304_s0, %s2852_s24  ;;  %s25_s21 = int_to_ptr.vmem [resolvable:$true] %s24_s21 }
  0x18   :  { %p2856_p9 = scmp.lt.u32.totalorder %s2852_s24, %s3304_s0 }
  0x1a   :  { %p2858_p10 = pnand %p2856_p9, %p2853_p8 }
  0x1c   :  { %2861 = shalt.err (!%p2858_p10)
}
  0x1d   :  { %s2862_s29 = scalar_lea.vmem %s25_s21, 256  ;;  %p2867_p12 = scmp.lt.s32.totalorder %s25_s21, %s25_s21 }
  0x1e   :  { %p2863_p11 = scmp.ne.s32.totalorder %s25_s21, %s2862_s29  ;;  %p2868_p13 = scmp.lt.s32.totalorder %s2862_s29, %s2862_s29 }
  0x20   :  { %p2869_p0 = por %p2868_p13, %p2867_p12 }
  0x22   :  { %p2870_p1 = pnand %p2869_p0, %p2863_p11 }
  0x24   :  { %2873 = shalt.err (!%p2870_p1)
}
  0x25   :  { %s2928_s1 = smov 128   ;;  %s2929_s30 = smov 8  }
  0x26   :  { %30 = dma.hbm_to_vmem [thread:$0]  %s3304_s0, 256, %s25_s21, [#allocation4], %s2928_s1, %s2928_s1, %s2929_s30  }
  0x27   :  { %s2930_s11 = smov [#allocation8]   ;;  %s2874_s15 = scalar_lea.hbm %s3307_s3, 2048 }
  0x28   :  { %s50_s12 = sshll.u32 %s2930_s11, 4  ;;  %p2875_p2 = scmp.ne.s32.totalorder %s3307_s3, %s2874_s15  ;;  %s51_s12 = int_to_ptr.vmem [resolvable:$true] %s50_s12 }
  0x29   :  { %p2878_p3 = scmp.lt.u32.totalorder %s2874_s15, %s3307_s3 }
  0x2b   :  { %p2880_p4 = pnand %p2878_p3, %p2875_p2 }
  0x2d   :  { %2883 = shalt.err (!%p2880_p4)
}
  0x2e   :  { %s2884_s19 = scalar_lea.vmem %s51_s12, 2048  ;;  %p2889_p6 = scmp.lt.s32.totalorder %s51_s12, %s51_s12 }
  0x2f   :  { %p2885_p5 = scmp.ne.s32.totalorder %s51_s12, %s2884_s19  ;;  %p2890_p7 = scmp.lt.s32.totalorder %s2884_s19, %s2884_s19 }
  0x31   :  { %p2891_p8 = por %p2890_p7, %p2889_p6 }
  0x33   :  { %p2892_p9 = pnand %p2891_p8, %p2885_p5 }
  0x35   :  { %2895 = shalt.err (!%p2892_p9)
}
  0x36   :  { %56 = dma.hbm_to_vmem [thread:$0]  %s3307_s3, 2048, %s51_s12, [#allocation7], %s2928_s1, %s2928_s1, %s2929_s30  }
  0x37   :  { %2918 = dma.done.wait [#allocation4], 256  }
  0x38   :  { %2919 = vsyncadd [#allocation4], 4294967040 }
  0x39   :  { %2920 = dma.done.wait [#allocation7], 8192  }
  0x3a   :  { %2921 = vsyncadd [#allocation7], 4294959104  ;;  %v2931_v1 = vmov 0.0   ;;  %v75_v2 = vld [vmem:[#allocation6 + $0x8] sm:$0xff]  ;;  %v78_v3 = vld [vmem:[#allocation6 + $0x20] sm:$0xff]  ;;  %vm2932_vm0 = vmmov 0  }
  0x3b   :  { %203 = vmatprep.mubr.f32.mxu0 %v2931_v1  ;;  %v74_v4 = vld [vmem:[#allocation6] sm:$0xff]  ;;  %v2664_v5 = vpack.c.bf16 %v78_v3, %v75_v2  ;;  %v77_v6 = vld [vmem:[#allocation6 + $0x18] sm:$0xff]  ;;  %v84_v8 = vld [vmem:[#allocation6 + $0x50] sm:$0xff]  ;;  %vm293_vm1 = vcmask 261120   ;;  %s2933_s22 = smov 96   ;;  %vm370_vm2 = vcmask 64512  }
  0x3c   :  { %v81_v7 = vld [vmem:[#allocation6 + $0x38] sm:$0xff]  ;;  %v2666_v9 = vpack.c.bf16 %v77_v6, %v74_v4  ;;  %v80_v11 = vld [vmem:[#allocation6 + $0x30] sm:$0xff]  ;;  %v83_v12 = vld [vmem:[#allocation6 + $0x48] sm:$0xff]  ;;  %s2935_s23 = smov 32   ;;  %vm1297_vm3 = vcmask 7168   ;;  %s2937_s28 = smov [#allocation9]  }
  0x3d   :  { %v2668_v10 = vpack.c.bf16 %v84_v8, %v81_v7  ;;  %v87_v13 = vld [vmem:[#allocation6 + $0x68] sm:$0xff]  ;;  %2665 = vmatprep.subr.bf16.mxu0 %v2664_v5  ;;  %v90_v14 = vld [vmem:[#allocation6 + $0x80] sm:$0xff]  ;;  %v2670_v15 = vpack.c.bf16 %v83_v12, %v80_v11  ;;  %v89_v18 = vld [vmem:[#allocation6 + $0x78] sm:$0xff]  ;;  %s2315_s29 = sshll.u32 %s2937_s28, 4  ;;  %s2316_s29 = int_to_ptr.vmem [resolvable:$true] %s2315_s29 }
  0x3e   :  { %2667 = vmatpush1.bf16.msra.mxu0 %v2666_v9  ;;  %v2672_v16 = vpack.c.bf16 %v90_v14, %v87_v13  ;;  %v86_v17 = vld [vmem:[#allocation6 + $0x60] sm:$0xff]  ;;  %v93_v19 = vld [vmem:[#allocation6 + $0x98] sm:$0xff]  ;;  %v96_v20 = vld [vmem:[#allocation6 + $0xb0] sm:$0xff]  ;;  %v124_v13 = vlaneseq  ;;  %s2896_s9 = scalar_lea.vmem %s2316_s29, 256  ;;  %p2901_p11 = scmp.lt.s32.totalorder %s2316_s29, %s2316_s29 }
  0x3f   :  { %2669 = vmatprep.subr.bf16.mxu0 %v2668_v10  ;;  %v2674_v21 = vpack.c.bf16 %v89_v18, %v86_v17  ;;  %v2676_v22 = vpack.c.bf16 %v96_v20, %v93_v19  ;;  %v92_v23 = vld [vmem:[#allocation6 + $0x90] sm:$0xff]  ;;  %v95_v24 = vld [vmem:[#allocation6 + $0xa8] sm:$0xff]  ;;  %v102_v26 = vld [vmem:[#allocation6 + $0xe0] sm:$0xff]  ;;  %p2897_p10 = scmp.ne.s32.totalorder %s2316_s29, %s2896_s9  ;;  %p2902_p12 = scmp.lt.s32.totalorder %s2896_s9, %s2896_s9 }
  0x40   :  { %v99_v25 = vld [vmem:[#allocation6 + $0xc8] sm:$0xff]  ;;  %v3029_v27 = vld [vmem:[#allocation3] sm:$0xff]  ;;  %v82_v30 = vld [vmem:[#allocation6 + $0x40] sm:$0xff]  ;;  %v2678_v31 = vpack.c.bf16 %v95_v24, %v92_v23  ;;  %v125_v14 = vshrl.u32 %v124_v13, 7 }
  0x41   :  { %v76_v28 = vld [vmem:[#allocation6 + $0x10] sm:$0xff]  ;;  %v79_v29 = vld [vmem:[#allocation6 + $0x28] sm:$0xff]  ;;  %2493 = vmatprep.mubr.f32.mxu1 %v3029_v27  ;;  %v98_v32 = vld [vmem:[#allocation6 + $0xc0] sm:$0xff]  ;;  %v2680_v35 = vpack.c.bf16 %v102_v26, %v99_v25  ;;  %p2903_p13 = por %p2902_p12, %p2901_p11 }
  0x42   :  { %2671 = vmatpush1.bf16.msra.mxu0 %v2670_v15  ;;  %v2696_v33 = vpack.c.bf16 %v79_v29, %v76_v28  ;;  %v85_v34 = vld [vmem:[#allocation6 + $0x58] sm:$0xff]  ;;  %v88_v38 = vld [vmem:[#allocation6 + $0x70] sm:$0xff]  ;;  %v91_v39 = vld [vmem:[#allocation6 + $0x88] sm:$0xff]  ;;  %v126_v15 = vsub.s32 0, %v125_v14  ;;  %v130_v17 = vsub.s32 1, %v125_v14  ;;  %v134_v25 = vsub.s32 2, %v125_v14 }
  0x43   :  { %2673 = vmatprep.subr.bf16.mxu0 %v2672_v16  ;;  %v101_v36 = vld [vmem:[#allocation6 + $0xd8] sm:$0xff]  ;;  %v2700_v37 = vpack.c.bf16 %v85_v34, %v82_v30  ;;  %v108_v41 = vld [vmem:[#allocation6 + $0x110] sm:$0xff]  ;;  %v2704_v44 = vpack.c.bf16 %v91_v39, %v88_v38  ;;  %v107_v46 = vld [vmem:[#allocation6 + $0x108] sm:$0xff]  ;;  %p2904_p0 = pnand %p2903_p13, %p2897_p10 }
  0x44   :  { %v105_v40 = vld [vmem:[#allocation6 + $0xf8] sm:$0xff]  ;;  %2697 = vmatprep.subr.bf16.mxu1 %v2696_v33  ;;  %v2682_v42 = vpack.c.bf16 %v101_v36, %v98_v32  ;;  %v104_v43 = vld [vmem:[#allocation6 + $0xf0] sm:$0xff]  ;;  %v94_v47 = vld [vmem:[#allocation6 + $0xa0] sm:$0xff] }
  0x45   :  { %2699 = vmatpush3.bf16.msra.mxu1 %v2696_v33  ;;  %v2684_v45 = vpack.c.bf16 %v108_v41, %v105_v40  ;;  %v97_v48 = vld [vmem:[#allocation6 + $0xb8] sm:$0xff]  ;;  %v111_v49 = vld [vmem:[#allocation6 + $0x128] sm:$0xff]  ;;  %v114_v50 = vld [vmem:[#allocation6 + $0x140] sm:$0xff]  ;;  %v2686_v51 = vpack.c.bf16 %v107_v46, %v104_v43 }
  0x46   :  { %2675 = vmatpush1.bf16.msra.mxu0 %v2674_v21  ;;  %2701 = vmatprep.subr.bf16.mxu1 %v2700_v37  ;;  %v110_v52 = vld [vmem:[#allocation6 + $0x120] sm:$0xff]  ;;  %v2708_v53 = vpack.c.bf16 %v97_v48, %v94_v47  ;;  %v2688_v54 = vpack.c.bf16 %v114_v50, %v111_v49  ;;  %v113_v55 = vld [vmem:[#allocation6 + $0x138] sm:$0xff]  ;;  %v100_v56 = vld [vmem:[#allocation6 + $0xd0] sm:$0xff]  ;;  %v2936_v50 = vmov 0.0|0.0  }
  0x47   :  { %2677 = vmatprep.subr.bf16.mxu0 %v2676_v22  ;;  %v103_v57 = vld [vmem:[#allocation6 + $0xe8] sm:$0xff]  ;;  %v117_v58 = vld [vmem:[#allocation6 + $0x158] sm:$0xff]  ;;  %v120_v59 = vld [vmem:[#allocation6 + $0x170] sm:$0xff]  ;;  %v2690_v60 = vpack.c.bf16 %v113_v55, %v110_v52 }
  0x48   :  { %v116_v61 = vld [vmem:[#allocation6 + $0x150] sm:$0xff]  ;;  %v2712_v62 = vpack.c.bf16 %v103_v57, %v100_v56  ;;  %v2692_v63 = vpack.c.bf16 %v120_v59, %v117_v58  ;;  %v119_v0 = vld [vmem:[#allocation6 + $0x168] sm:$0xff]  ;;  %v106_v2 = vld [vmem:[#allocation6 + $0x100] sm:$0xff] }
  0x49   :  { %2703 = vmatpush3.bf16.msra.mxu1 %v2700_v37  ;;  %v109_v3 = vld [vmem:[#allocation6 + $0x118] sm:$0xff]  ;;  %v2694_v4 = vpack.c.bf16 %v119_v0, %v116_v61  ;;  %v112_v6 = vld [vmem:[#allocation6 + $0x130] sm:$0xff]  ;;  %v115_v7 = vld [vmem:[#allocation6 + $0x148] sm:$0xff] }
  0x4a   :  { %2679 = vmatpush1.bf16.msra.mxu0 %v2678_v31  ;;  %2705 = vmatprep.subr.bf16.mxu1 %v2704_v44  ;;  %v2716_v5 = vpack.c.bf16 %v109_v3, %v106_v2  ;;  %v2720_v8 = vpack.c.bf16 %v115_v7, %v112_v6  ;;  %v118_v9 = vld [vmem:[#allocation6 + $0x160] sm:$0xff]  ;;  %v121_v10 = vld [vmem:[#allocation6 + $0x178] sm:$0xff]  ;;  %v122_v16 = vld [vmem:[%s3306_s2] sm:$0x7]  ;;  %s2934_s2 = smov 64  }
  0x4b   :  { %2681 = vmatprep.subr.bf16.mxu0 %v2680_v35  ;;  %v2724_v11 = vpack.c.bf16 %v121_v10, %v118_v9  ;;  %v73_v12 = vld [vmem:[#allocation3 + $0x8] sm:$0xff]  ;;  %v3043_v18 = vrot.slane %v122_v16, %v126_v15  ;;  %v3045_v19 = vrot.slane %v122_v16, %v130_v17  ;;  %v135_v26 = vrot.slane %v122_v16, %v134_v25  ;;  %v627_v55 = vld [vmem:[#allocation8 + $0x20] sm:$0xff]  ;;  %v628_v56 = vld [vmem:[#allocation8 + $0x28] sm:$0xff] }
  0x4c   :  { %v629_v57 = vld [vmem:[#allocation8 + $0x30] sm:$0xff]  ;;  %v3093_v58 = vpack.c.bf16 %v628_v56, %v627_v55  ;;  %v630_v59 = vld [vmem:[#allocation8 + $0x38] sm:$0xff]  ;;  %v457_v0 = vld [vmem:[#allocation8 + $0x8] sm:$0xff] }
  0x4d   :  { %2707 = vmatpush3.bf16.msra.mxu1 %v2704_v44  ;;  %v459_v6 = vld [vmem:[#allocation8 + $0x18] sm:$0xff] }
  0x4e   :  { %2683 = vmatpush1.bf16.msra.mxu0 %v2682_v42  ;;  %2709 = vmatprep.subr.bf16.mxu1 %v2708_v53 }
  0x4f   :  { %2685 = vmatprep.subr.bf16.mxu0 %v2684_v45 }
  0x51   :  { %2711 = vmatpush3.bf16.msra.mxu1 %v2708_v53 }
  0x52   :  { %2687 = vmatpush1.bf16.msra.mxu0 %v2686_v51  ;;  %2713 = vmatprep.subr.bf16.mxu1 %v2712_v62 }
  0x53   :  { %2689 = vmatprep.subr.bf16.mxu0 %v2688_v54 }
  0x55   :  { %2715 = vmatpush3.bf16.msra.mxu1 %v2712_v62 }
  0x56   :  { %2691 = vmatpush1.bf16.msra.mxu0 %v2690_v60  ;;  %2717 = vmatprep.subr.bf16.mxu1 %v2716_v5  ;;  %v3096_v60 = vpack.c.bf16 %v630_v59, %v629_v57 }
  0x57   :  { %2693 = vmatprep.subr.bf16.mxu0 %v2692_v63  ;;  %v456_v63 = vld [vmem:[#allocation8] sm:$0xff] }
  0x58   :  { %v3102_v3 = vpack.c.bf16 %v457_v0, %v456_v63  ;;  %v1187_v63 = vld [vmem:[#allocation8 + $0x60] sm:$0xff]  ;;  %v1188_v0 = vld [vmem:[#allocation8 + $0x68] sm:$0xff] }
  0x59   :  { %2719 = vmatpush3.bf16.msra.mxu1 %v2716_v5  ;;  %v458_v5 = vld [vmem:[#allocation8 + $0x10] sm:$0xff] }
  0x5a   :  { %2695 = vmatpush1.bf16.msra.mxu0 %v2694_v4  ;;  %2721 = vmatprep.subr.bf16.mxu1 %v2720_v8  ;;  %v3106_v7 = vpack.c.bf16 %v459_v6, %v458_v5 }
  0x5b   :  { %2501 = vmatprep.subr.mxu0 %v2931_v1 }
  0x5d   :  { %204 = vmatmul.mubr.f32.vlgmr.msra.gmra.mrb[0].mxu0 %v3029_v27  ;;  %2723 = vmatpush3.bf16.msra.mxu1 %v2720_v8 }
  0x5e   :  { %209 = vmatprep.mubr.f32.mxu0 %v2931_v1  ;;  %2725 = vmatprep.subr.bf16.mxu1 %v2724_v11 }
  0x61   :  { %2727 = vmatpush3.bf16.msra.mxu1 %v2724_v11  ;;  %210 = vmatmul.mubr.f32.gmra.mrb[2].mxu0 %v73_v12 }
  0x62   :  { %2496 = vmatprep.subr.mxu1 %v2931_v1  ;;  %2503 = vmatprep.mubr.msk.f32.mxu0 %vm2932_vm0, %v2931_v1 }
  0x64   :  { %2494 = vmatmul.mubr.f32.vlgmr.msra.gmra.mrb[0].mxu1 %v73_v12 }
  0x65   :  { %2498 = vmatprep.mubr.msk.f32.mxu1 %vm2932_vm0, %v2931_v1 }
 0x130   :  { %v205_v20 = vpop.f32.mrb[0].mxu0 }
 0x131   :  { %v206_v21 = vadd.f32 %v205_v20, %v3043_v18  ;;  %v207_v22 = vpop.f32.mrb[1].mxu0 }
 0x132   :  { %v208_v23 = vadd.f32 %v207_v22, %v3045_v19 }
 0x133   :  { %v3051_v24 = vmul.f32 0.17677669, %v206_v21 }
 0x134   :  { %462 = vrot.lane.b32.xlu0 %v208_v23, %s2933_s22  ;;  %2497 = vmatpush3.xpose.msk.msra.mxu1 %vm293_vm1, %v208_v23  ;;  %v3083_v51 = vpop.f32.mrb[2].mxu0 }
 0x135   :  { %2506 = vmatprep.subr.mxu1 %v2931_v1  ;;  %v3085_v52 = vpop.f32.mrb[3].mxu0  ;;  %v212_v59 = vadd.f32 %v3083_v51, %v3043_v18 }
 0x137   :  { %2499 = vmatmul.mubr.msk.f32.vlgmr.msra.gmra.mrb[2].mxu1 %vm293_vm1, %v3051_v24  ;;  %v2495_v27 = vpop.f32.mrb[0].mxu1 }
 0x138   :  { %460 = vrot.lane.b32.xlu0 %v3051_v24, %s2933_s22  ;;  %2508 = vmatprep.mubr.msk.f32.mxu1 %vm2932_vm0, %v2931_v1  ;;  %v3060_v28 = vadd.f32 %v2495_v27, %v135_v26  ;;  %v282_v29 = vpop.f32.mrb[1].mxu1 }
 0x139   :  { %v3062_v30 = vadd.f32 %v282_v29, %v135_v26 }
 0x13b   :  { %2502 = vmatpush3.msra.mxu0 %v3062_v30 }
 0x13c   :  { %2511 = vmatprep.subr.mxu0 %v2931_v1 }
 0x1a6   :  { %v463_v31 = vpop.permute.xlu0 %462 }
 0x1a7   :  { %2507 = vmatpush3.xpose.msk.msra.mxu1 %vm293_vm1, %v463_v31 }
 0x1a8   :  { %2728 = vmatprep.subr.bf16.mxu1 %v2936_v50 }
 0x1aa   :  { %v461_v32 = vpop.permute.xlu0 %460 }
 0x1ab   :  { %2509 = vmatmul.mubr.msk.f32.vlgmr.msra.gmra.mrb[4].mxu1 %vm293_vm1, %v461_v32 }
 0x1ac   :  { %2524 = vmatprep.mubr.msk.f32.mxu1 %vm2932_vm0, %v2931_v1  ;;  %2730 = vmatpush3.bf16.msra.mxu1 %v3093_v58 }
 0x1ad   :  { %2731 = vmatprep.subr.bf16.mxu1 %v2936_v50 }
 0x1b0   :  { %2733 = vmatpush3.bf16.msra.mxu1 %v3096_v60 }
 0x1b1   :  { %2538 = vmatprep.subr.mxu1 %v2931_v1 }
 0x20a   :  { %v366_v33 = vpop.f32.mrb[2].mxu1 }
 0x20b   :  { %v2500_v34 = vpop.f32.mrb[3].mxu1  ;;  %v371_v35 = vsel %vm370_vm2, %v366_v33, -inf }
 0x20c   :  { %372 = vmax.xlane.f32.xlu1 %v371_v35  ;;  %v944_v34 = vld [vmem:[#allocation8 + $0x48] sm:$0xff]  ;;  %v945_v35 = vld [vmem:[#allocation8 + $0x50] sm:$0xff] }
 0x27e   :  { %v534_v36 = vpop.f32.mrb[4].mxu1 }
 0x27f   :  { %v2510_v37 = vpop.f32.mrb[5].mxu1  ;;  %v538_v38 = vsel %vm370_vm2, %v534_v36, -inf }
 0x280   :  { %539 = vmax.xlane.f32.xlu1 %v538_v38  ;;  %v946_v37 = vld [vmem:[#allocation8 + $0x58] sm:$0xff] }
 0x281   :  { %v3134_v38 = vpack.c.bf16 %v946_v37, %v945_v35 }
 0x299   :  { %v373_v39 = vpop.xlane.xlu1 %372 }
 0x29a   :  { %v374_v40 = vsub.f32 %v366_v33, %v373_v39  ;;  %v943_v33 = vld [vmem:[#allocation8 + $0x40] sm:$0xff] }
 0x29c   :  { %v375_v41 = vmul.f32 1.442695, %v374_v40 }
 0x29e   :  { %2790 = vpow2.f32 %v375_v41 }
 0x2a8   :  { %v2791_v42 = vpop.eup %2790 }
 0x2a9   :  { %v377_v43 = vsel %vm370_vm2, %v2791_v42, 0.0 }
 0x2aa   :  { %378 = vadd.xlane.f32.xlu0 %v377_v43 }
 0x2c0   :  { %867 = vrot.lane.b32.xlu0 %v3062_v30, %s2934_s2 }
 0x2c4   :  { %1023 = vrot.lane.b32.xlu0 %v208_v23, %s2935_s23 }
 0x30d   :  { %v540_v44 = vpop.xlane.xlu1 %539 }
 0x30e   :  { %v541_v45 = vsub.f32 %v534_v36, %v540_v44  ;;  %v3131_v36 = vpack.c.bf16 %v944_v34, %v943_v33 }
 0x310   :  { %v542_v46 = vmul.f32 1.442695, %v541_v45 }
 0x312   :  { %2792 = vpow2.f32 %v542_v46 }
 0x31c   :  { %v2793_v47 = vpop.eup %2792 }
 0x31d   :  { %v544_v48 = vsel %vm370_vm2, %v2793_v47, 0.0 }
 0x31e   :  { %545 = vadd.xlane.f32.xlu1 %v544_v48 }
 0x32f   :  { %551 = vrot.lane.b32.xlu1 %v3062_v30, %s2933_s22 }
 0x333   :  { %779 = vrot.lane.b32.xlu1 %v208_v23, %s2934_s2 }
 0x337   :  { %v379_v49 = vpop.xlane.xlu0 %378  ;;  %777 = vrot.lane.b32.xlu1 %v3051_v24, %s2934_s2 }
 0x338   :  { %2794 = vrcp.f32 %v379_v49 }
 0x33b   :  { %v868_v9 = vpop.permute.xlu0 %867 }
 0x33f   :  { %v1024_v39 = vpop.permute.xlu0 %1023 }
 0x342   :  { %v2795_v53 = vpop.eup %2794 }
 0x343   :  { %v3087_v54 = vmul.f32 %v2795_v53, %v2791_v42 }
 0x345   :  { %2504 = vmatmul.mubr.msk.f32.vlgmr.msra.gmra.mrb[4].mxu0 %vm370_vm2, %v3087_v54 }
 0x346   :  { %2513 = vmatprep.mubr.msk.f32.mxu0 %vm2932_vm0, %v2931_v1 }
 0x3ab   :  { %v546_v61 = vpop.xlane.xlu1 %545 }
 0x3ac   :  { %2796 = vrcp.f32 %v546_v61  ;;  %v3159_v61 = vadd.f32 %v3085_v52, %v3045_v19 }
 0x3af   :  { %v552_v62 = vpop.permute.xlu1 %551 }
 0x3b0   :  { %2512 = vmatpush3.msra.mxu0 %v552_v62  ;;  %v3163_v62 = vmul.f32 0.17677669, %v212_v59 }
 0x3b1   :  { %2734 = vmatprep.subr.bf16.mxu0 %v2936_v50 }
 0x3b3   :  { %v780_v11 = vpop.permute.xlu1 %779 }
 0x3b6   :  { %v2797_v2 = vpop.eup %2796 }
 0x3b7   :  { %v548_v4 = vmul.f32 %v2797_v2, %v2793_v47  ;;  %v778_v14 = vpop.permute.xlu1 %777  ;;  %v1189_v2 = vld [vmem:[#allocation8 + $0x70] sm:$0xff] }
 0x3b9   :  { %2514 = vmatmul.mubr.msk.f32.vlgmr.msra.gmra.mrb[6].mxu0 %vm370_vm2, %v548_v4  ;;  %v549_v42 = vadd.f32 %v548_v4, %v3087_v54  ;;  %v3167_v4 = vpack.c.bf16 %v1188_v0, %v1187_v63 }
 0x3ba   :  { %2736 = vmatpush3.bf16.msra.mxu0 %v3102_v3  ;;  %2535 = vmatprep.mubr.msk.f32.mxu0 %vm2932_vm0, %v2931_v1 }
 0x3bb   :  { %2737 = vmatprep.subr.bf16.mxu0 %v2936_v50 }
 0x3be   :  { %2739 = vmatpush3.bf16.msra.mxu0 %v3106_v7 }
 0x3bf   :  { %2543 = vmatprep.subr.mxu0 %v2931_v1 }
 0x418   :  { %v452_v8 = vpop.f32.mrb[4].mxu0 }
 0x419   :  { %v2505_v10 = vpop.f32.mrb[5].mxu0  ;;  %2536 = vmatmul.mubr.msk.f32.vlgmr.msra.gmra.mrb[8].mxu0 %vm293_vm1, %v452_v8 }
 0x41a   :  { %2544 = vmatpush3.msra.mxu0 %v868_v9  ;;  %2545 = vmatprep.mubr.msk.f32.mxu0 %vm2932_vm0, %v2931_v1 }
 0x41b   :  { %2559 = vmatprep.subr.mxu0 %v2931_v1 }
 0x48c   :  { %v623_v12 = vpop.f32.mrb[6].mxu0 }
 0x48d   :  { %v2515_v13 = vpop.f32.mrb[7].mxu0  ;;  %2525 = vmatmul.mubr.msk.f32.vlgmr.msra.gmra.mrb[6].mxu1 %vm293_vm1, %v623_v12 }
 0x48e   :  { %2539 = vmatpush3.xpose.msk.msra.mxu1 %vm293_vm1, %v780_v11  ;;  %2540 = vmatprep.mubr.msk.f32.mxu1 %vm2932_vm0, %v2931_v1 }
 0x48f   :  { %2740 = vmatprep.subr.bf16.mxu1 %v2936_v50 }
 0x491   :  { %2541 = vmatmul.mubr.msk.f32.vlgmr.msra.gmra.mrb[8].mxu1 %vm293_vm1, %v778_v14 }
 0x492   :  { %2556 = vmatprep.mubr.msk.f32.mxu1 %vm2932_vm0, %v2931_v1  ;;  %2742 = vmatpush3.bf16.msra.mxu1 %v3131_v36 }
 0x493   :  { %2743 = vmatprep.subr.bf16.mxu1 %v2936_v50 }
 0x496   :  { %2745 = vmatpush3.bf16.msra.mxu1 %v3134_v38 }
 0x497   :  { %2746 = vmatprep.subr.bf16.mxu1 %v2936_v50 }
 0x4ec   :  { %v773_v15 = vpop.f32.mrb[8].mxu0 }
 0x4ed   :  { %v2537_v16 = vpop.f32.mrb[9].mxu0 }
 0x560   :  { %v700_v17 = vpop.f32.mrb[6].mxu1 }
 0x561   :  { %v3125_v20 = vadd.f32 %v773_v15, %v700_v17  ;;  %v2526_v21 = vpop.f32.mrb[7].mxu1 }
 0x564   :  { %v851_v22 = vpop.f32.mrb[8].mxu1 }
 0x565   :  { %v2542_v23 = vpop.f32.mrb[9].mxu1  ;;  %v855_v25 = vsel %vm370_vm2, %v851_v22, -inf }
 0x566   :  { %856 = vmax.xlane.f32.xlu1 %v855_v25 }
 0x5f3   :  { %v857_v26 = vpop.xlane.xlu1 %856 }
 0x5f4   :  { %v858_v27 = vsub.f32 %v851_v22, %v857_v26 }
 0x5f6   :  { %v859_v29 = vmul.f32 1.442695, %v858_v27 }
 0x5f8   :  { %2798 = vpow2.f32 %v859_v29 }
 0x602   :  { %v2799_v31 = vpop.eup %2798 }
 0x603   :  { %v861_v32 = vsel %vm370_vm2, %v2799_v31, 0.0 }
 0x604   :  { %862 = vadd.xlane.f32.xlu0 %v861_v32 }
 0x61a   :  { %1021 = vrot.lane.b32.xlu0 %v3051_v24, %s2935_s23 }
 0x691   :  { %v863_v40 = vpop.xlane.xlu0 %862 }
 0x692   :  { %2800 = vrcp.f32 %v863_v40 }
 0x695   :  { %v1022_v44 = vpop.permute.xlu0 %1021 }
 0x69c   :  { %v2801_v24 = vpop.eup %2800 }
 0x69d   :  { %v865_v41 = vmul.f32 %v2801_v24, %v2799_v31 }
 0x69f   :  { %2546 = vmatmul.mubr.msk.f32.vlgmr.msra.gmra.mrb[10].mxu0 %vm370_vm2, %v865_v41  ;;  %v866_v43 = vadd.f32 %v865_v41, %v549_v42 }
 0x6a0   :  { %2560 = vmatpush3.xpose.msk.msra.mxu0 %vm293_vm1, %v1024_v39  ;;  %2561 = vmatprep.mubr.msk.f32.mxu0 %vm2932_vm0, %v2931_v1 }
 0x6a1   :  { %2564 = vmatprep.subr.mxu0 %v2931_v1 }
 0x6a3   :  { %2562 = vmatmul.mubr.msk.f32.vlgmr.msra.gmra.mrb[12].mxu0 %vm293_vm1, %v1022_v44 }
 0x6a4   :  { %2566 = vmatprep.mubr.msk.f32.mxu0 %vm2932_vm0, %v2931_v1 }
 0x772   :  { %v939_v45 = vpop.f32.mrb[10].mxu0 }
 0x773   :  { %v2547_v46 = vpop.f32.mrb[11].mxu0  ;;  %2557 = vmatmul.mubr.msk.f32.vlgmr.msra.gmra.mrb[10].mxu1 %vm293_vm1, %v939_v45 }
 0x774   :  { %2577 = vmatprep.mubr.msk.f32.mxu1 %vm2932_vm0, %v2931_v1  ;;  %2748 = vmatpush3.bf16.msra.mxu1 %v3167_v4 }
 0x775   :  { %2749 = vmatprep.subr.bf16.mxu1 %v2936_v50 }
 0x776   :  { %v1095_v47 = vpop.f32.mrb[12].mxu0 }
 0x777   :  { %v2563_v48 = vpop.f32.mrb[13].mxu0  ;;  %v1099_v49 = vsel %vm370_vm2, %v1095_v47, -inf }
 0x778   :  { %1100 = vmax.xlane.f32.xlu0 %v1099_v49 }
 0x805   :  { %v1101_v53 = vpop.xlane.xlu0 %1100 }
 0x806   :  { %v1102_v54 = vsub.f32 %v1095_v47, %v1101_v53 }
 0x808   :  { %v1103_v55 = vmul.f32 1.442695, %v1102_v54 }
 0x80a   :  { %2802 = vpow2.f32 %v1103_v55 }
 0x814   :  { %v2803_v56 = vpop.eup %2802 }
 0x815   :  { %v1105_v57 = vsel %vm370_vm2, %v2803_v56, 0.0 }
 0x816   :  { %1106 = vadd.xlane.f32.xlu1 %v1105_v57 }
 0x827   :  { %1111 = vrot.lane.b32.xlu1 %v3062_v30, %s2935_s23  ;;  %v1190_v30 = vld [vmem:[#allocation8 + $0x78] sm:$0xff] }
 0x828   :  { %v3170_v18 = vpack.c.bf16 %v1190_v30, %v1189_v2 }
 0x82a   :  { %2751 = vmatpush3.bf16.msra.mxu1 %v3170_v18 }
 0x82b   :  { %1468 = vrot.lane.b32.xlu1 %v3159_v61, %s2933_s22  ;;  %2590 = vmatprep.subr.mxu1 %v2931_v1 }
 0x82f   :  { %1466 = vrot.lane.b32.xlu1 %v3163_v62, %s2933_s22 }
 0x846   :  { %v1016_v19 = vpop.f32.mrb[10].mxu1 }
 0x847   :  { %v1020_v51 = vadd.f32 %v1016_v19, %v3125_v20  ;;  %v2558_v52 = vpop.f32.mrb[11].mxu1 }
 0x8a3   :  { %v1107_v5 = vpop.xlane.xlu1 %1106 }
 0x8a4   :  { %2804 = vrcp.f32 %v1107_v5 }
 0x8a7   :  { %v1112_v6 = vpop.permute.xlu1 %1111 }
 0x8a8   :  { %2565 = vmatpush3.msra.mxu0 %v1112_v6 }
 0x8a9   :  { %2580 = vmatprep.subr.mxu0 %v2931_v1 }
 0x8ab   :  { %v1469_v12 = vpop.permute.xlu1 %1468 }
 0x8ae   :  { %v2805_v8 = vpop.eup %2804 }
 0x8af   :  { %v1109_v9 = vmul.f32 %v2805_v8, %v2803_v56  ;;  %v1467_v15 = vpop.permute.xlu1 %1466 }
 0x8b1   :  { %2567 = vmatmul.mubr.msk.f32.vlgmr.msra.gmra.mrb[14].mxu0 %vm370_vm2, %v1109_v9  ;;  %v1110_v10 = vadd.f32 %v1109_v9, %v866_v43 }
 0x8b2   :  { %2581 = vmatpush3.xpose.msk.msra.mxu0 %vm293_vm1, %v3159_v61  ;;  %2582 = vmatprep.mubr.msk.f32.mxu0 %vm2932_vm0, %v2931_v1 }
 0x8b3   :  { %2585 = vmatprep.subr.mxu0 %v2931_v1  ;;  %v1299_v11 = vmul.f32 0.25, %v1110_v10 }
 0x8b5   :  { %2583 = vmatmul.mubr.msk.f32.vlgmr.msra.gmra.mrb[16].mxu0 %vm293_vm1, %v3163_v62  ;;  %1300 = vst.msk [vmem:[#allocation9] sm:$0xff] %vm370_vm2, %v1299_v11 }
 0x8b6   :  { %2586 = vmatpush3.msra.mxu0 %v3060_v28  ;;  %2587 = vmatprep.mubr.msk.f32.mxu0 %vm2932_vm0, %v2931_v1 }
 0x8b7   :  { %2595 = vmatprep.subr.mxu0 %v2931_v1 }
 0x984   :  { %v1183_v13 = vpop.f32.mrb[14].mxu0 }
 0x985   :  { %v2568_v14 = vpop.f32.mrb[15].mxu0  ;;  %2578 = vmatmul.mubr.msk.f32.vlgmr.msra.gmra.mrb[12].mxu1 %vm293_vm1, %v1183_v13 }
 0x986   :  { %2591 = vmatpush3.xpose.msk.msra.mxu1 %vm293_vm1, %v1469_v12  ;;  %2592 = vmatprep.mubr.msk.f32.mxu1 %vm2932_vm0, %v2931_v1 }
 0x987   :  { %2752 = vmatprep.subr.bf16.mxu1 %v2936_v50 }
 0x988   :  { %v1373_v16 = vpop.f32.mrb[16].mxu0 }
 0x989   :  { %v2584_v17 = vpop.f32.mrb[17].mxu0  ;;  %2593 = vmatmul.mubr.msk.f32.vlgmr.msra.gmra.mrb[14].mxu1 %vm293_vm1, %v1467_v15  ;;  %v1377_v20 = vsel %vm370_vm2, %v1373_v16, -inf }
 0x98a   :  { %1378 = vmax.xlane.f32.xlu1 %v1377_v20  ;;  %2754 = vmatpush3.bf16.msra.mxu1 %v3093_v58 }
 0x98b   :  { %2755 = vmatprep.subr.bf16.mxu1 %v2936_v50  ;;  %2608 = vmatprep.mubr.msk.f32.mxu1 %vm2932_vm0, %v2931_v1 }
 0x98e   :  { %2757 = vmatpush3.bf16.msra.mxu1 %v3096_v60 }
 0x98f   :  { %2622 = vmatprep.subr.mxu1 %v2931_v1 }
 0x99b   :  { %1783 = vrot.lane.b32.xlu1 %v3163_v62, %s2934_s2 }
 0xa17   :  { %v1379_v21 = vpop.xlane.xlu1 %1378 }
 0xa18   :  { %v1380_v22 = vsub.f32 %v1373_v16, %v1379_v21 }
 0xa1a   :  { %v1381_v23 = vmul.f32 1.442695, %v1380_v22 }
 0xa1c   :  { %2806 = vpow2.f32 %v1381_v23 }
 0xa26   :  { %v2807_v32 = vpop.eup %2806 }
 0xa27   :  { %v1383_v60 = vsel %vm370_vm2, %v2807_v32, 0.0 }
 0xa58   :  { %v1260_v25 = vpop.f32.mrb[12].mxu1 }
 0xa59   :  { %v3205_v26 = vadd.f32 %v1260_v25, %v1020_v51  ;;  %v2579_v58 = vpop.f32.mrb[13].mxu1 }
 0xa5c   :  { %v1540_v27 = vpop.f32.mrb[14].mxu1 }
 0xa5d   :  { %v2594_v29 = vpop.f32.mrb[15].mxu1  ;;  %v1544_v31 = vsel %vm370_vm2, %v1540_v27, -inf }
 0xa5e   :  { %1545 = vmax.xlane.f32.xlu0 %v1544_v31 }
 0xa62   :  { %1384 = vadd.xlane.f32.xlu0 %v1383_v60 }
 0xaeb   :  { %v1546_v33 = vpop.xlane.xlu0 %1545 }
 0xaec   :  { %v1547_v34 = vsub.f32 %v1540_v27, %v1546_v33  ;;  %v2348_v27 = vld [vmem:[#allocation2] ss:$0 sm:$0xff] }
 0xaee   :  { %v1548_v35 = vmul.f32 1.442695, %v1547_v34 }
 0xaef   :  { %v1385_v37 = vpop.xlane.xlu0 %1384 }
 0xaf0   :  { %2808 = vpow2.f32 %v1548_v35 }
 0xaf1   :  { %2810 = vrcp.f32 %v1385_v37 }
 0xafa   :  { %v2809_v39 = vpop.eup %2808 }
 0xafb   :  { %v2811_v40 = vpop.eup %2810  ;;  %v1550_v24 = vsel %vm370_vm2, %v2809_v39, 0.0 }
 0xafc   :  { %v3210_v41 = vmul.f32 %v2811_v40, %v2807_v32  ;;  %1551 = vadd.xlane.f32.xlu0 %v1550_v24 }
 0xafe   :  { %2588 = vmatmul.mubr.msk.f32.vlgmr.msra.gmra.mrb[18].mxu0 %vm370_vm2, %v3210_v41 }
 0xaff   :  { %2597 = vmatprep.mubr.msk.f32.mxu0 %vm2932_vm0, %v2931_v1 }
 0xb12   :  { %1557 = vrot.lane.b32.xlu0 %v3060_v28, %s2933_s22 }
 0xb16   :  { %1785 = vrot.lane.b32.xlu0 %v3159_v61, %s2934_s2 }
 0xb89   :  { %v1552_v42 = vpop.xlane.xlu0 %1551 }
 0xb8a   :  { %2812 = vrcp.f32 %v1552_v42 }
 0xb8d   :  { %v1558_v43 = vpop.permute.xlu0 %1557 }
 0xb8e   :  { %2596 = vmatpush3.msra.mxu0 %v1558_v43 }
 0xb8f   :  { %2758 = vmatprep.subr.bf16.mxu0 %v2936_v50 }
 0xb91   :  { %v1786_v49 = vpop.permute.xlu0 %1785 }
 0xb94   :  { %v2813_v44 = vpop.eup %2812 }
 0xb95   :  { %v1554_v45 = vmul.f32 %v2813_v44, %v2809_v39 }
 0xb97   :  { %2598 = vmatmul.mubr.msk.f32.vlgmr.msra.gmra.mrb[20].mxu0 %vm370_vm2, %v1554_v45 }
 0xb98   :  { %2760 = vmatpush3.bf16.msra.mxu0 %v3102_v3  ;;  %2619 = vmatprep.mubr.msk.f32.mxu0 %vm2932_vm0, %v2931_v1  ;;  %v1784_v3 = vpop.permute.xlu1 %1783 }
 0xb99   :  { %2761 = vmatprep.subr.bf16.mxu0 %v2936_v50 }
 0xb9c   :  { %2763 = vmatpush3.bf16.msra.mxu0 %v3106_v7 }
 0xb9d   :  { %2627 = vmatprep.subr.mxu0 %v2931_v1 }
 0xbd1   :  { %v1458_v46 = vpop.f32.mrb[18].mxu0 }
 0xbd2   :  { %v2589_v47 = vpop.f32.mrb[19].mxu0  ;;  %2620 = vmatmul.mubr.msk.f32.vlgmr.msra.gmra.mrb[22].mxu0 %vm293_vm1, %v1458_v46 }
 0xbd3   :  { %2629 = vmatprep.mubr.msk.f32.mxu0 %vm2932_vm0, %v2931_v1 }
 0xc6a   :  { %v1629_v48 = vpop.f32.mrb[20].mxu0 }
 0xc6b   :  { %v2599_v53 = vpop.f32.mrb[21].mxu0  ;;  %2609 = vmatmul.mubr.msk.f32.vlgmr.msra.gmra.mrb[16].mxu1 %vm293_vm1, %v1629_v48 }
 0xc6c   :  { %2623 = vmatpush3.xpose.msk.msra.mxu1 %vm293_vm1, %v1786_v49  ;;  %2624 = vmatprep.mubr.msk.f32.mxu1 %vm2932_vm0, %v2931_v1 }
 0xc6d   :  { %2764 = vmatprep.subr.bf16.mxu1 %v2936_v50 }
 0xc6f   :  { %2625 = vmatmul.mubr.msk.f32.vlgmr.msra.gmra.mrb[18].mxu1 %vm293_vm1, %v1784_v3 }
 0xc70   :  { %2766 = vmatpush3.bf16.msra.mxu1 %v3131_v36  ;;  %2640 = vmatprep.mubr.msk.f32.mxu1 %vm2932_vm0, %v2931_v1 }
 0xc71   :  { %2767 = vmatprep.subr.bf16.mxu1 %v2936_v50 }
 0xc74   :  { %2769 = vmatpush3.bf16.msra.mxu1 %v3134_v38 }
 0xc75   :  { %2770 = vmatprep.subr.bf16.mxu1 %v2936_v50 }
 0xca5   :  { %v1779_v7 = vpop.f32.mrb[22].mxu0 }
 0xca6   :  { %v2621_v54 = vpop.f32.mrb[23].mxu0 }
 0xd3e   :  { %v1706_v55 = vpop.f32.mrb[16].mxu1 }
 0xd3f   :  { %v1780_v56 = vadd.f32 %v1779_v7, %v1706_v55  ;;  %v2610_v57 = vpop.f32.mrb[17].mxu1 }
 0xd42   :  { %v1857_v59 = vpop.f32.mrb[18].mxu1 }
 0xd43   :  { %v2626_v63 = vpop.f32.mrb[19].mxu1  ;;  %v1861_v0 = vsel %vm370_vm2, %v1857_v59, -inf }
 0xd44   :  { %1862 = vmax.xlane.f32.xlu0 %v1861_v0 }
 0xd5a   :  { %1873 = vrot.lane.b32.xlu0 %v3060_v28, %s2934_s2 }
 0xd5e   :  { %2027 = vrot.lane.b32.xlu0 %v3163_v62, %s2935_s23  ;;  %v1555_v62 = vadd.f32 %v1554_v45, %v3210_v41 }
 0xdd1   :  { %v1863_v36 = vpop.xlane.xlu0 %1862 }
 0xdd2   :  { %v1864_v38 = vsub.f32 %v1857_v59, %v1863_v36 }
 0xdd4   :  { %v1865_v2 = vmul.f32 1.442695, %v1864_v38 }
 0xdd5   :  { %v1874_v30 = vpop.permute.xlu0 %1873 }
 0xdd6   :  { %2814 = vpow2.f32 %v1865_v2  ;;  %2628 = vmatpush3.msra.mxu0 %v1874_v30 }
 0xdd7   :  { %2643 = vmatprep.subr.mxu0 %v2931_v1 }
 0xdd9   :  { %v2028_v10 = vpop.permute.xlu0 %2027 }
 0xde0   :  { %v2815_v19 = vpop.eup %2814 }
 0xde1   :  { %v1867_v51 = vsel %vm370_vm2, %v2815_v19, 0.0 }
 0xde2   :  { %1868 = vadd.xlane.f32.xlu1 %v1867_v51 }
 0xdf3   :  { %2029 = vrot.lane.b32.xlu1 %v3159_v61, %s2935_s23 }
 0xe6f   :  { %v1869_v52 = vpop.xlane.xlu1 %1868 }
 0xe70   :  { %2816 = vrcp.f32 %v1869_v52 }
 0xe73   :  { %v2030_v8 = vpop.permute.xlu1 %2029 }
 0xe7a   :  { %v2817_v5 = vpop.eup %2816 }
 0xe7b   :  { %v1871_v6 = vmul.f32 %v2817_v5, %v2815_v19 }
 0xe7d   :  { %2630 = vmatmul.mubr.msk.f32.vlgmr.msra.gmra.mrb[24].mxu0 %vm370_vm2, %v1871_v6  ;;  %v1872_v9 = vadd.f32 %v1871_v6, %v1555_v62 }
 0xe7e   :  { %2644 = vmatpush3.xpose.msk.msra.mxu0 %vm293_vm1, %v2030_v8  ;;  %2645 = vmatprep.mubr.msk.f32.mxu0 %vm2932_vm0, %v2931_v1 }
 0xe7f   :  { %2648 = vmatprep.subr.mxu0 %v2931_v1 }
 0xe81   :  { %2646 = vmatmul.mubr.msk.f32.vlgmr.msra.gmra.mrb[26].mxu0 %vm293_vm1, %v2028_v10 }
 0xe82   :  { %2650 = vmatprep.mubr.msk.f32.mxu0 %vm2932_vm0, %v2931_v1 }
 0xf50   :  { %v1945_v61 = vpop.f32.mrb[24].mxu0 }
 0xf51   :  { %v2631_v11 = vpop.f32.mrb[25].mxu0  ;;  %2641 = vmatmul.mubr.msk.f32.vlgmr.msra.gmra.mrb[20].mxu1 %vm293_vm1, %v1945_v61 }
 0xf52   :  { %2772 = vmatpush3.bf16.msra.mxu1 %v3167_v4  ;;  %2661 = vmatprep.mubr.msk.f32.mxu1 %vm2932_vm0, %v2931_v1  ;;  %v2346_v1 = vld [vmem:[%s3308_s4] ss:$0 sm:$0xff] }
 0xf53   :  { %2773 = vmatprep.subr.bf16.mxu1 %v2936_v50  ;;  %v1272_v4 = vadd.f32 %v2346_v1, %v3205_v26 }
 0xf54   :  { %v2101_v12 = vpop.f32.mrb[26].mxu0 }
 0xf55   :  { %v2647_v13 = vpop.f32.mrb[27].mxu0  ;;  %v2105_v14 = vsel %vm370_vm2, %v2101_v12, -inf }
 0xf56   :  { %2106 = vmax.xlane.f32.xlu0 %v2105_v14  ;;  %2775 = vmatpush3.bf16.msra.mxu1 %v3170_v18  ;;  %v2347_v18 = vld [vmem:[%s3309_s5] ss:$0 sm:$0xff] }
 0xf6c   :  { %2117 = vrot.lane.b32.xlu0 %v3060_v28, %s2935_s23  ;;  %v1280_v28 = vmul.f32 %v2347_v18, %v1272_v4 }
 0xfe3   :  { %v2107_v15 = vpop.xlane.xlu0 %2106 }
 0xfe4   :  { %v2108_v16 = vsub.f32 %v2101_v12, %v2107_v15 }
 0xfe6   :  { %v2109_v17 = vmul.f32 1.442695, %v2108_v16 }
 0xfe7   :  { %v2118_v20 = vpop.permute.xlu0 %2117 }
 0xfe8   :  { %2818 = vpow2.f32 %v2109_v17  ;;  %2649 = vmatpush3.msra.mxu0 %v2118_v20 }
 0xff2   :  { %v2819_v50 = vpop.eup %2818 }
 0xff3   :  { %v2111_v21 = vsel %vm370_vm2, %v2819_v50, 0.0 }
 0xff4   :  { %2112 = vadd.xlane.f32.xlu1 %v2111_v21 }
 0xff8   :  { %1281 = vadd.xlane.f32.xlu1 %v1280_v28 }
0x1024   :  { %v2022_v22 = vpop.f32.mrb[20].mxu1 }
0x1025   :  { %v2026_v23 = vadd.f32 %v2022_v22, %v1780_v56  ;;  %v2642_v25 = vpop.f32.mrb[21].mxu1 }
0x1081   :  { %v2113_v58 = vpop.xlane.xlu1 %2112 }
0x1082   :  { %2820 = vrcp.f32 %v2113_v58 }
0x1085   :  { %v1282_v29 = vpop.xlane.xlu1 %1281 }
0x1086   :  { %v1290_v31 = vadd.f32 %v2348_v27, %v1282_v29 }
0x1088   :  { %v2349_v32 = vmul.f32 -1.442695, %v1290_v31 }
0x108a   :  { %2822 = vpow2.f32 %v2349_v32 }
0x108c   :  { %v2821_v26 = vpop.eup %2820 }
0x108d   :  { %v2115_v60 = vmul.f32 %v2821_v26, %v2819_v50 }
0x108f   :  { %2651 = vmatmul.mubr.msk.f32.vlgmr.msra.gmra.mrb[28].mxu0 %vm370_vm2, %v2115_v60  ;;  %v2116_v33 = vadd.f32 %v2115_v60, %v1872_v9 }
0x1091   :  { %v2305_v34 = vmul.f32 0.25, %v2116_v33 }
0x1093   :  { %2307 = vst.msk [vmem:[#allocation9 + $0x8] sm:$0xff] %vm370_vm2, %v2305_v34 }
0x1094   :  { %v2823_v35 = vpop.eup %2822 }
0x1095   :  { %v1294_v37 = vadd.f32 1.0, %v2823_v35 }
0x1097   :  { %2824 = vrcp.f32 %v1294_v37 }
0x10a1   :  { %v2825_v39 = vpop.eup %2824 }
0x10a2   :  { %1298 = vst.msk [vmem:[%s3311_s7] sm:$0xff] %vm1297_vm3, %v2825_v39 }
0x1162   :  { %v2189_v40 = vpop.f32.mrb[28].mxu0 }
0x1163   :  { %v2652_v24 = vpop.f32.mrb[29].mxu0  ;;  %2662 = vmatmul.mubr.msk.f32.vlgmr.msra.gmra.mrb[22].mxu1 %vm293_vm1, %v2189_v40 }
0x1236   :  { %v2266_v41 = vpop.f32.mrb[22].mxu1 }
0x1237   :  { %v2270_v42 = vadd.f32 %v2266_v41, %v2026_v23  ;;  %v2663_v43 = vpop.f32.mrb[23].mxu1 }
0x1239   :  { %v2278_v44 = vadd.f32 %v2346_v1, %v2270_v42 }
0x123b   :  { %v2286_v45 = vmul.f32 %v2347_v18, %v2278_v44 }
0x123d   :  { %2287 = vadd.xlane.f32.xlu1 %v2286_v45 }
0x123e   :  { %2907 = shalt.err (!%p2904_p0)
}
0x123f   :  { %s2908_s12 = scalar_lea.hbm %s3312_s8, 256 }
0x1240   :  { %p2909_p1 = scmp.ne.s32.totalorder %s3312_s8, %s2908_s12  ;;  %p2912_p2 = scmp.lt.u32.totalorder %s2908_s12, %s3312_s8 }
0x1242   :  { %p2914_p3 = pnand %p2912_p2, %p2909_p1 }
0x1244   :  { %2917 = shalt.err (!%p2914_p3)
}
0x1245   :  { %2321 = dma.vmem_to_hbm [thread:$0]  %s2316_s29, 256, %s3312_s8, [#allocation5], %s2928_s1, %s2928_s1, %s2929_s30  }
0x12ca   :  { %v2288_v46 = vpop.xlane.xlu1 %2287 }
0x12cb   :  { %v2296_v47 = vadd.f32 %v2348_v27, %v2288_v46 }
0x12cd   :  { %v2369_v48 = vmul.f32 -1.442695, %v2296_v47 }
0x12cf   :  { %2826 = vpow2.f32 %v2369_v48 }
0x12d9   :  { %v2827_v49 = vpop.eup %2826 }
0x12da   :  { %v2300_v53 = vadd.f32 1.0, %v2827_v49 }
0x12dc   :  { %2828 = vrcp.f32 %v2300_v53 }
0x12e6   :  { %v2829_v3 = vpop.eup %2828 }
0x12e7   :  { %2370 = vst.msk [vmem:[%s3311_s7 + $0x8] sm:$0xff] %vm1297_vm3, %v2829_v3 }
0x12e8   :  { %2922 = dma.done.wait [#allocation5], 256  }
0x12e9   :  { %2923 = vsyncadd [#allocation5], 4294967040 }
0x12ea   :  { %2327 = vsyncpa [#allocation4], 1 }
0x12eb   :  { %2328 = vsyncpa [#allocation7], 1 }
0x12ec   :  { %2329 = vsyncpa [#allocation5], 1 }

</bundles_post_ra>
